<compile_context>
chip_gen: v7x
topology: tpu7x:2x2x1
jax: 0.10.0
libtpu: 0.0.40
codegen_flags: <defaults>
</compile_context>

<pallas_src>
import functools

import jax
import jax.numpy as jnp
from jax import lax
from jax.experimental import pallas as pl
from jax.experimental.pallas import tpu as pltpu

LANE = 128


def _round_up(x, m):
    return (x + m - 1) // m * m


# ----------------------------------------------------------------------------
# Pallas kernels
# ----------------------------------------------------------------------------
def _conv3x3_relu_kernel(x_ref, w_ref, b_ref, o_ref, *, pool):
    # x_ref: (1, H, W+2, Cin)      W-padded input tile (one batch element), bf16/f32
    # w_ref: (3, 3, Cin, Cout_t)   per-tap weights (Cin, Cout lane-dense multiples of 128)
    # b_ref: (1, Cout_t)           bias (f32)
    # o_ref: (1, H, W, Cout_t)  or (1, H//2, W//2, Cout_t) when pool=True
    _, H, Wp, Cin = x_ref.shape
    W = Wp - 2
    Cout = o_ref.shape[-1]

    x = x_ref[0]                                              # (H, W+2, Cin)
    # 1-row zero halo on the leading (major) axis only: contiguous copy, no
    # sublane/lane relayout.  The W halo already lives in the HBM layout.
    zr = jnp.zeros((1, Wp, Cin), x.dtype)
    xp = jnp.concatenate([zr, x, zr], axis=0)                 # (H+2, W+2, Cin)

    acc = jnp.zeros((H * W, Cout), jnp.float32)
    for dy in range(3):
        rows = xp[dy:dy + H]                                  # major-axis slice: cheap
        for dx in range(3):
            # One MXU matmul per tap, K = Cin (>= 128 after channel padding).
            tap = rows[:, dx:dx + W, :].reshape(H * W, Cin)
            acc = acc + jnp.dot(tap, w_ref[dy, dx],
                                preferred_element_type=jnp.float32)

    acc = acc + b_ref[...]                                    # broadcast (1, Cout), f32
    acc = jnp.maximum(acc, 0.0)                               # fused ReLU (f32 VPU)
    y = acc.reshape(H, W, Cout)

    if pool:                                                  # fused MaxPool2x2
        Ho, Wo = H // 2, W // 2
        y = y.reshape(Ho, 2, W, Cout)
        y = jnp.maximum(y[:, 0], y[:, 1])                     # pool over H (layout-free)
        y = y.reshape(Ho, Wo, 2, Cout)
        y = jnp.maximum(y[:, :, 0, :], y[:, :, 1, :])         # pool over W
    o_ref[0] = y.astype(o_ref.dtype)


def _maxpool2x2_kernel(x_ref, o_ref):
    # Standalone MaxPool2d(2,2); only used when an 'M' does not follow a conv
    # (in real VGG cfgs every 'M' follows a conv, so this is normally fused away).
    _, H, W, C = x_ref.shape
    Ho, Wo = H // 2, W // 2
    y = x_ref[0]                                              # (H, W, C)
    y = y.reshape(Ho, 2, W, C)
    y = jnp.maximum(y[:, 0], y[:, 1])
    y = y.reshape(Ho, Wo, 2, C)
    o_ref[0] = jnp.maximum(y[:, :, 0, :], y[:, :, 1, :])


# ----------------------------------------------------------------------------
# Wrappers (pallas_call setup)
# ----------------------------------------------------------------------------
def conv3x3_relu(x_nhwc, w_hwio, b, *, pool=False, co_tile=LANE,
                 vmem_limit_bytes=None):
    """3x3 conv (stride 1, pad 1) + bias + ReLU, optionally with fused MaxPool2x2.

    x: (N, H, W, Cin_pad) NHWC, already channel-padded to a multiple of 128 and in
    the compute dtype (bf16 by default).  Weights/bias are the true-sized f32
    parameters; they are zero-padded here so padded channels contribute exactly 0.
    Returns (N, Ho, Wo, Cout_pad) in the compute dtype (lane-dense output).
    """
    N, H, W, Cin_p = x_nhwc.shape
    kh, kw, Cin_t, Cout_t = w_hwio.shape
    assert (kh, kw) == (3, 3)
    assert Cin_t <= Cin_p and Cin_p % LANE == 0
    if pool:
        assert H % 2 == 0 and W % 2 == 0, "MaxPool2x2 needs even H and W"
    cdt = x_nhwc.dtype
    Cout_p = _round_up(max(Cout_t, co_tile), co_tile)         # lane-dense output channels

    # Zero-pad weights/bias: padded input/output channels contribute 0 exactly.
    w_p = jnp.zeros((3, 3, Cin_p, Cout_p), cdt)
    w_p = w_p.at[:, :, :Cin_t, :Cout_t].set(w_hwio.astype(cdt))
    b_p = jnp.zeros((1, Cout_p), jnp.float32)
    b_p = b_p.at[0, :Cout_t].set(b.astype(jnp.float32))

    # 1-pixel W halo in the HBM layout (cheap) so the kernel never does a
    # sublane-shifting zero-column concat; the H halo stays in-kernel.
    x_p = jnp.pad(x_nhwc, ((0, 0), (0, 0), (1, 1), (0, 0)))

    Ho, Wo = (H // 2, W // 2) if pool else (H, W)
    grid = (N, Cout_p // co_tile)

    return pl.pallas_call(
        functools.partial(_conv3x3_relu_kernel, pool=pool),
        out_shape=jax.ShapeDtypeStruct((N, Ho, Wo, Cout_p), cdt),
        grid_spec=pltpu.PrefetchScalarGridSpec(
            num_scalar_prefetch=0,
            grid=grid,
            in_specs=[
                # x block is invariant along the co axis (co is fastest) -> not re-DMA'd.
                pl.BlockSpec((1, H, W + 2, Cin_p), lambda n, co: (n, 0, 0, 0)),
                pl.BlockSpec((3, 3, Cin_p, co_tile), lambda n, co: (0, 0, 0, co)),
                pl.BlockSpec((1, co_tile), lambda n, co: (0, co)),
            ],
            out_specs=pl.BlockSpec((1, Ho, Wo, co_tile), lambda n, co: (n, 0, 0, co)),
        ),
        compiler_params=pltpu.CompilerParams(
            dimension_semantics=("parallel", "parallel"),
            vmem_limit_bytes=vmem_limit_bytes,   # raise toward ~96 MiB on v6e / ~48 MiB on v7x for full-size VGG
        ),
    )(x_p, w_p, b_p)


def maxpool2x2(x_nhwc):
    """MaxPool2d(kernel=2, stride=2).  x: (N, H, W, C) with C lane-dense."""
    N, H, W, C = x_nhwc.shape
    assert H % 2 == 0 and W % 2 == 0
    Ho, Wo = H // 2, W // 2
    return pl.pallas_call(
        _maxpool2x2_kernel,
        out_shape=jax.ShapeDtypeStruct((N, Ho, Wo, C), x_nhwc.dtype),
        grid_spec=pltpu.PrefetchScalarGridSpec(
            num_scalar_prefetch=0,
            grid=(N,),
            in_specs=[pl.BlockSpec((1, H, W, C), lambda n: (n, 0, 0, 0))],
            out_specs=pl.BlockSpec((1, Ho, Wo, C), lambda n: (n, 0, 0, 0)),
        ),
        compiler_params=pltpu.CompilerParams(dimension_semantics=("parallel",)),
    )(x_nhwc)


# ----------------------------------------------------------------------------
# VGG.features = make_layers(cfg): Conv3x3(pad=1)+ReLU for ints, MaxPool2x2 for 'M'
# ----------------------------------------------------------------------------
CFG = [8, 8, 'M', 16, 'M']     # small stand-in for e.g. VGG-11's [64,'M',128,'M',...]


def init_vgg_params(key, cfg, in_channels):
    """Deterministic init matching VGG._initialize_weights (kaiming fan_out, bias=0)."""
    layers = []
    c = in_channels
    for v in cfg:
        if v == 'M':
            layers.append(('M', None, None))
        else:
            key, k = jax.random.split(key)
            fan_out = v * 3 * 3
            std = (2.0 / fan_out) ** 0.5
            w_oihw = jax.random.normal(k, (v, c, 3, 3), jnp.float32) * std
            w_hwio = jnp.transpose(w_oihw, (2, 3, 1, 0))       # OIHW -> HWIO
            b = jnp.zeros((v,), jnp.float32)
            layers.append(('C', w_hwio, b))
            c = v
    return layers


def vgg_features_forward(x_nchw, layers, compute_dtype=jnp.bfloat16, co_tile=LANE):
    """Forward of VGG.features.  Input/output in PyTorch NCHW layout.

    Runs the whole stack with lane-dense (128-multiple) channel padding and bf16
    matmul operands by default; the final result is sliced back to the true
    channel count and cast to the input dtype.
    """
    N, C, H, W = x_nchw.shape
    y = jnp.transpose(x_nchw, (0, 2, 3, 1)).astype(compute_dtype)   # NCHW -> NHWC
    Cp = _round_up(max(C, LANE), LANE)
    y = jnp.pad(y, ((0, 0), (0, 0), (0, 0), (0, Cp - C)))           # channel-pad once
    c_true = C
    i = 0
    while i < len(layers):
        kind, w, b = layers[i]
        if kind == 'C':
            fuse_pool = i + 1 < len(layers) and layers[i + 1][0] == 'M'
            y = conv3x3_relu(y, w, b, pool=fuse_pool, co_tile=co_tile)
            c_true = w.shape[-1]
            i += 2 if fuse_pool else 1
        else:
            y = maxpool2x2(y)
            i += 1
    y = y[..., :c_true].astype(x_nchw.dtype)                        # drop channel padding
    return jnp.transpose(y, (0, 3, 1, 2))                           # NHWC -> NCHW


# ----------------------------------------------------------------------------
# Pure-JAX reference for a correctness check
# ----------------------------------------------------------------------------
def _ref_forward(x_nchw, layers):
    y = jnp.transpose(x_nchw, (0, 2, 3, 1))
    for kind, w, b in layers:
        if kind == 'M':
            y = lax.reduce_window(y, -jnp.inf, lax.max,
                                  (1, 2, 2, 1), (1, 2, 2, 1), 'VALID')
        else:
            y = lax.conv_general_dilated(
                y, w, window_strides=(1, 1), padding=((1, 1), (1, 1)),
                dimension_numbers=('NHWC', 'HWIO', 'NHWC'))
            y = jnp.maximum(y + b[None, None, None, :], 0.0)
    return jnp.transpose(y, (0, 3, 1, 2))


if __name__ == "__main__":
    key = jax.random.PRNGKey(0)
    kx, kp = jax.random.split(key)

    # Small shapes consistent with a VGG feature stack: NCHW input.
    x = jax.random.normal(kx, (2, 4, 16, 16), jnp.float32)
    layers = init_vgg_params(kp, CFG, in_channels=4)

    # bf16 matmul operands by default (f32 accumulation inside the kernel); pass
    # compute_dtype=jnp.float32 for a bit-tighter check if desired.
    out = vgg_features_forward(x, layers)
    out = jax.block_until_ready(out)

    assert out.shape == (2, 16, 4, 4), out.shape
    ref = _ref_forward(x, layers)
    # Tolerance scaled for bf16 operands over three conv layers (f32 reference).
    if not jnp.allclose(out, ref, atol=5e-2, rtol=5e-2):
        raise SystemExit("Pallas output does not match JAX reference")

    print("KERNEL_OK")
</pallas_src>

<mosaic_0001>
module attributes {stable_mosaic.version = 11 : i64} {
  func.func @_conv3x3_relu_kernel(%arg0: i32, %arg1: i32, %arg2: memref<1x16x18x128xbf16, #tpu.memory_space<vmem>>, %arg3: memref<3x3x128x128xbf16, #tpu.memory_space<vmem>>, %arg4: memref<1x128xf32, #tpu.memory_space<vmem>>, %arg5: memref<1x16x16x128xbf16, #tpu.memory_space<vmem>>) attributes {dimension_semantics = [#tpu.dimension_semantics<parallel>, #tpu.dimension_semantics<parallel>], iteration_bounds = array<i64: 2, 1>, scalar_prefetch = 0 : i64, scratch_operands = 0 : i64, tpu.core_type = #tpu.core_type<tc>, window_params = [{transform_indices = @transform_0, window_bounds = array<i64: 1, 16, 18, 128>}, {transform_indices = @transform_1, window_bounds = array<i64: 3, 3, 128, 128>}, {transform_indices = @transform_2, window_bounds = array<i64: 1, 128>}, {transform_indices = @transform_3, window_bounds = array<i64: 1, 16, 16, 128>}]} {
    %c0 = arith.constant 0 : index
    %c0_0 = arith.constant 0 : index
    %c0_1 = arith.constant 0 : index
    %c0_2 = arith.constant 0 : index
    %0 = vector.load %arg2[%c0, %c0_0, %c0_1, %c0_2] : memref<1x16x18x128xbf16, #tpu.memory_space<vmem>>, vector<1x16x18x128xbf16>
    %1 = vector.shape_cast %0 : vector<1x16x18x128xbf16> to vector<16x18x128xbf16>
    %cst = arith.constant 0.000000e+00 : bf16
    %2 = vector.broadcast %cst : bf16 to vector<1x18x128xbf16>
    %3 = tpu.concatenate %2, %1, %2 in 0 : vector<1x18x128xbf16>, vector<16x18x128xbf16>, vector<1x18x128xbf16> -> vector<18x18x128xbf16>
    %cst_3 = arith.constant 0.000000e+00 : f32
    %4 = vector.broadcast %cst_3 : f32 to vector<256x128xf32>
    %5 = vector.extract_strided_slice %3 {offsets = [0, 0, 0], sizes = [16, 18, 128], strides = [1, 1, 1]} : vector<18x18x128xbf16> to vector<16x18x128xbf16>
    %6 = vector.extract_strided_slice %5 {offsets = [0, 0, 0], sizes = [16, 16, 128], strides = [1, 1, 1]} : vector<16x18x128xbf16> to vector<16x16x128xbf16>
    %7 = vector.shape_cast %6 : vector<16x16x128xbf16> to vector<256x128xbf16>
    %c0_4 = arith.constant 0 : index
    %c0_5 = arith.constant 0 : index
    %c0_6 = arith.constant 0 : index
    %c0_7 = arith.constant 0 : index
    %8 = vector.load %arg3[%c0_4, %c0_5, %c0_6, %c0_7] : memref<3x3x128x128xbf16, #tpu.memory_space<vmem>>, vector<1x1x128x128xbf16>
    %9 = vector.shape_cast %8 : vector<1x1x128x128xbf16> to vector<128x128xbf16>
    %cst_8 = arith.constant dense<0.000000e+00> : vector<256x128xf32>
    %10 = tpu.matmul %7, %9, %cst_8 {dimension_numbers = #tpu.dot_dimension_numbers<[1], [0], [0], [1], [0, 0, 1, 1], [], []>} : vector<256x128xbf16>, vector<128x128xbf16>, vector<256x128xf32> -> vector<256x128xf32>
    %11 = arith.addf %4, %10 : vector<256x128xf32>
    %12 = vector.extract_strided_slice %5 {offsets = [0, 1, 0], sizes = [16, 16, 128], strides = [1, 1, 1]} : vector<16x18x128xbf16> to vector<16x16x128xbf16>
    %13 = vector.shape_cast %12 : vector<16x16x128xbf16> to vector<256x128xbf16>
    %c0_9 = arith.constant 0 : index
    %c1 = arith.constant 1 : index
    %c0_10 = arith.constant 0 : index
    %c0_11 = arith.constant 0 : index
    %14 = vector.load %arg3[%c0_9, %c1, %c0_10, %c0_11] : memref<3x3x128x128xbf16, #tpu.memory_space<vmem>>, vector<1x1x128x128xbf16>
    %15 = vector.shape_cast %14 : vector<1x1x128x128xbf16> to vector<128x128xbf16>
    %cst_12 = arith.constant dense<0.000000e+00> : vector<256x128xf32>
    %16 = tpu.matmul %13, %15, %cst_12 {dimension_numbers = #tpu.dot_dimension_numbers<[1], [0], [0], [1], [0, 0, 1, 1], [], []>} : vector<256x128xbf16>, vector<128x128xbf16>, vector<256x128xf32> -> vector<256x128xf32>
    %17 = arith.addf %11, %16 : vector<256x128xf32>
    %18 = vector.extract_strided_slice %5 {offsets = [0, 2, 0], sizes = [16, 16, 128], strides = [1, 1, 1]} : vector<16x18x128xbf16> to vector<16x16x128xbf16>
    %19 = vector.shape_cast %18 : vector<16x16x128xbf16> to vector<256x128xbf16>
    %c0_13 = arith.constant 0 : index
    %c2 = arith.constant 2 : index
    %c0_14 = arith.constant 0 : index
    %c0_15 = arith.constant 0 : index
    %20 = vector.load %arg3[%c0_13, %c2, %c0_14, %c0_15] : memref<3x3x128x128xbf16, #tpu.memory_space<vmem>>, vector<1x1x128x128xbf16>
    %21 = vector.shape_cast %20 : vector<1x1x128x128xbf16> to vector<128x128xbf16>
    %cst_16 = arith.constant dense<0.000000e+00> : vector<256x128xf32>
    %22 = tpu.matmul %19, %21, %cst_16 {dimension_numbers = #tpu.dot_dimension_numbers<[1], [0], [0], [1], [0, 0, 1, 1], [], []>} : vector<256x128xbf16>, vector<128x128xbf16>, vector<256x128xf32> -> vector<256x128xf32>
    %23 = arith.addf %17, %22 : vector<256x128xf32>
    %24 = vector.extract_strided_slice %3 {offsets = [1, 0, 0], sizes = [16, 18, 128], strides = [1, 1, 1]} : vector<18x18x128xbf16> to vector<16x18x128xbf16>
    %25 = vector.extract_strided_slice %24 {offsets = [0, 0, 0], sizes = [16, 16, 128], strides = [1, 1, 1]} : vector<16x18x128xbf16> to vector<16x16x128xbf16>
    %26 = vector.shape_cast %25 : vector<16x16x128xbf16> to vector<256x128xbf16>
    %c1_17 = arith.constant 1 : index
    %c0_18 = arith.constant 0 : index
    %c0_19 = arith.constant 0 : index
    %c0_20 = arith.constant 0 : index
    %27 = vector.load %arg3[%c1_17, %c0_18, %c0_19, %c0_20] : memref<3x3x128x128xbf16, #tpu.memory_space<vmem>>, vector<1x1x128x128xbf16>
    %28 = vector.shape_cast %27 : vector<1x1x128x128xbf16> to vector<128x128xbf16>
    %cst_21 = arith.constant dense<0.000000e+00> : vector<256x128xf32>
    %29 = tpu.matmul %26, %28, %cst_21 {dimension_numbers = #tpu.dot_dimension_numbers<[1], [0], [0], [1], [0, 0, 1, 1], [], []>} : vector<256x128xbf16>, vector<128x128xbf16>, vector<256x128xf32> -> vector<256x128xf32>
    %30 = arith.addf %23, %29 : vector<256x128xf32>
    %31 = vector.extract_strided_slice %24 {offsets = [0, 1, 0], sizes = [16, 16, 128], strides = [1, 1, 1]} : vector<16x18x128xbf16> to vector<16x16x128xbf16>
    %32 = vector.shape_cast %31 : vector<16x16x128xbf16> to vector<256x128xbf16>
    %c1_22 = arith.constant 1 : index
    %c1_23 = arith.constant 1 : index
    %c0_24 = arith.constant 0 : index
    %c0_25 = arith.constant 0 : index
    %33 = vector.load %arg3[%c1_22, %c1_23, %c0_24, %c0_25] : memref<3x3x128x128xbf16, #tpu.memory_space<vmem>>, vector<1x1x128x128xbf16>
    %34 = vector.shape_cast %33 : vector<1x1x128x128xbf16> to vector<128x128xbf16>
    %cst_26 = arith.constant dense<0.000000e+00> : vector<256x128xf32>
    %35 = tpu.matmul %32, %34, %cst_26 {dimension_numbers = #tpu.dot_dimension_numbers<[1], [0], [0], [1], [0, 0, 1, 1], [], []>} : vector<256x128xbf16>, vector<128x128xbf16>, vector<256x128xf32> -> vector<256x128xf32>
    %36 = arith.addf %30, %35 : vector<256x128xf32>
    %37 = vector.extract_strided_slice %24 {offsets = [0, 2, 0], sizes = [16, 16, 128], strides = [1, 1, 1]} : vector<16x18x128xbf16> to vector<16x16x128xbf16>
    %38 = vector.shape_cast %37 : vector<16x16x128xbf16> to vector<256x128xbf16>
    %c1_27 = arith.constant 1 : index
    %c2_28 = arith.constant 2 : index
    %c0_29 = arith.constant 0 : index
    %c0_30 = arith.constant 0 : index
    %39 = vector.load %arg3[%c1_27, %c2_28, %c0_29, %c0_30] : memref<3x3x128x128xbf16, #tpu.memory_space<vmem>>, vector<1x1x128x128xbf16>
    %40 = vector.shape_cast %39 : vector<1x1x128x128xbf16> to vector<128x128xbf16>
    %cst_31 = arith.constant dense<0.000000e+00> : vector<256x128xf32>
    %41 = tpu.matmul %38, %40, %cst_31 {dimension_numbers = #tpu.dot_dimension_numbers<[1], [0], [0], [1], [0, 0, 1, 1], [], []>} : vector<256x128xbf16>, vector<128x128xbf16>, vector<256x128xf32> -> vector<256x128xf32>
    %42 = arith.addf %36, %41 : vector<256x128xf32>
    %43 = vector.extract_strided_slice %3 {offsets = [2, 0, 0], sizes = [16, 18, 128], strides = [1, 1, 1]} : vector<18x18x128xbf16> to vector<16x18x128xbf16>
    %44 = vector.extract_strided_slice %43 {offsets = [0, 0, 0], sizes = [16, 16, 128], strides = [1, 1, 1]} : vector<16x18x128xbf16> to vector<16x16x128xbf16>
    %45 = vector.shape_cast %44 : vector<16x16x128xbf16> to vector<256x128xbf16>
    %c2_32 = arith.constant 2 : index
    %c0_33 = arith.constant 0 : index
    %c0_34 = arith.constant 0 : index
    %c0_35 = arith.constant 0 : index
    %46 = vector.load %arg3[%c2_32, %c0_33, %c0_34, %c0_35] : memref<3x3x128x128xbf16, #tpu.memory_space<vmem>>, vector<1x1x128x128xbf16>
    %47 = vector.shape_cast %46 : vector<1x1x128x128xbf16> to vector<128x128xbf16>
    %cst_36 = arith.constant dense<0.000000e+00> : vector<256x128xf32>
    %48 = tpu.matmul %45, %47, %cst_36 {dimension_numbers = #tpu.dot_dimension_numbers<[1], [0], [0], [1], [0, 0, 1, 1], [], []>} : vector<256x128xbf16>, vector<128x128xbf16>, vector<256x128xf32> -> vector<256x128xf32>
    %49 = arith.addf %42, %48 : vector<256x128xf32>
    %50 = vector.extract_strided_slice %43 {offsets = [0, 1, 0], sizes = [16, 16, 128], strides = [1, 1, 1]} : vector<16x18x128xbf16> to vector<16x16x128xbf16>
    %51 = vector.shape_cast %50 : vector<16x16x128xbf16> to vector<256x128xbf16>
    %c2_37 = arith.constant 2 : index
    %c1_38 = arith.constant 1 : index
    %c0_39 = arith.constant 0 : index
    %c0_40 = arith.constant 0 : index
    %52 = vector.load %arg3[%c2_37, %c1_38, %c0_39, %c0_40] : memref<3x3x128x128xbf16, #tpu.memory_space<vmem>>, vector<1x1x128x128xbf16>
    %53 = vector.shape_cast %52 : vector<1x1x128x128xbf16> to vector<128x128xbf16>
    %cst_41 = arith.constant dense<0.000000e+00> : vector<256x128xf32>
    %54 = tpu.matmul %51, %53, %cst_41 {dimension_numbers = #tpu.dot_dimension_numbers<[1], [0], [0], [1], [0, 0, 1, 1], [], []>} : vector<256x128xbf16>, vector<128x128xbf16>, vector<256x128xf32> -> vector<256x128xf32>
    %55 = arith.addf %49, %54 : vector<256x128xf32>
    %56 = vector.extract_strided_slice %43 {offsets = [0, 2, 0], sizes = [16, 16, 128], strides = [1, 1, 1]} : vector<16x18x128xbf16> to vector<16x16x128xbf16>
    %57 = vector.shape_cast %56 : vector<16x16x128xbf16> to vector<256x128xbf16>
    %c2_42 = arith.constant 2 : index
    %c2_43 = arith.constant 2 : index
    %c0_44 = arith.constant 0 : index
    %c0_45 = arith.constant 0 : index
    %58 = vector.load %arg3[%c2_42, %c2_43, %c0_44, %c0_45] : memref<3x3x128x128xbf16, #tpu.memory_space<vmem>>, vector<1x1x128x128xbf16>
    %59 = vector.shape_cast %58 : vector<1x1x128x128xbf16> to vector<128x128xbf16>
    %cst_46 = arith.constant dense<0.000000e+00> : vector<256x128xf32>
    %60 = tpu.matmul %57, %59, %cst_46 {dimension_numbers = #tpu.dot_dimension_numbers<[1], [0], [0], [1], [0, 0, 1, 1], [], []>} : vector<256x128xbf16>, vector<128x128xbf16>, vector<256x128xf32> -> vector<256x128xf32>
    %61 = arith.addf %55, %60 : vector<256x128xf32>
    %c0_47 = arith.constant 0 : index
    %c0_48 = arith.constant 0 : index
    %62 = vector.load %arg4[%c0_47, %c0_48] : memref<1x128xf32, #tpu.memory_space<vmem>>, vector<1x128xf32>
    %63 = vector.broadcast %62 : vector<1x128xf32> to vector<256x128xf32>
    %64 = arith.addf %61, %63 : vector<256x128xf32>
    %cst_49 = arith.constant 0.000000e+00 : f32
    %65 = vector.broadcast %cst_49 : f32 to vector<256x128xf32>
    %66 = arith.maximumf %64, %65 : vector<256x128xf32>
    %67 = vector.shape_cast %66 : vector<256x128xf32> to vector<16x16x128xf32>
    %68 = arith.truncf %67 : vector<16x16x128xf32> to vector<16x16x128xbf16>
    %c0_50 = arith.constant 0 : index
    %c0_51 = arith.constant 0 : index
    %c0_52 = arith.constant 0 : index
    %c0_53 = arith.constant 0 : index
    %69 = vector.load %arg5[%c0_50, %c0_51, %c0_52, %c0_53] : memref<1x16x16x128xbf16, #tpu.memory_space<vmem>>, vector<1x16x16x128xbf16>
    %70 = vector.shape_cast %69 : vector<1x16x16x128xbf16> to vector<16x16x128xbf16>
    %71 = vector.shape_cast %68 : vector<16x16x128xbf16> to vector<1x16x16x128xbf16>
    tpu.vector_store %arg5[%c0_50, %c0_51, %c0_52, %c0_53], %71 {strides = array<i32>} : memref<1x16x16x128xbf16, #tpu.memory_space<vmem>>, vector<1x16x16x128xbf16>,
    return
  }
  func.func @transform_0(%arg0: i32, %arg1: i32) -> (i32, i32, i32, i32) {
    %c0_i32 = arith.constant 0 : i32
    %c0_i32_0 = arith.constant 0 : i32
    %c0_i32_1 = arith.constant 0 : i32
    %c0_i32_2 = arith.constant 0 : i32
    return %arg0, %c0_i32, %c0_i32_0, %c0_i32_1 : i32, i32, i32, i32
  }
  func.func @transform_1(%arg0: i32, %arg1: i32) -> (i32, i32, i32, i32) {
    %c0_i32 = arith.constant 0 : i32
    %c0_i32_0 = arith.constant 0 : i32
    %c0_i32_1 = arith.constant 0 : i32
    %c0_i32_2 = arith.constant 0 : i32
    return %c0_i32, %c0_i32_0, %c0_i32_1, %arg1 : i32, i32, i32, i32
  }
  func.func @transform_2(%arg0: i32, %arg1: i32) -> (i32, i32) {
    %c0_i32 = arith.constant 0 : i32
    %c0_i32_0 = arith.constant 0 : i32
    return %c0_i32, %arg1 : i32, i32
  }
  func.func @transform_3(%arg0: i32, %arg1: i32) -> (i32, i32, i32, i32) {
    %c0_i32 = arith.constant 0 : i32
    %c0_i32_0 = arith.constant 0 : i32
    %c0_i32_1 = arith.constant 0 : i32
    return %arg0, %c0_i32, %c0_i32_0, %arg1 : i32, i32, i32, i32
  }
}

</mosaic_0001>

<bundles_post_ra>
// kernel: tpu_custom_call.1
= control target key start
LH: loop header
LB: loop body
LE: loop exit
PB: predicated region body
PF: predicated region fallthrough
CT: control target
= control target key end

     0   :  { %8 = vsyncpa [#allocation3], 0  ;;  %s5750_s0 = inlined_call_operand.vmem [shape: bf16[2,16,18,128], index: 0, kind: input, shape index: {}]   ;;  %s5751_s1 = inlined_call_operand.vmem [shape: bf16[3,3,128,128], index: 1, kind: input, shape index: {}]   ;;  %s5752_s2 = inlined_call_operand.vmem [shape: f32[1,128], index: 2, kind: input, shape index: {}]   ;;  %s5753_s3 = inlined_call_operand.hbm [shape: bf16[2,16,16,128], index: 3, kind: output, shape index: {}]  }
   0x1   :  { %10 = vsyncpa [#allocation3 + $0x1], 0  ;;  %s4906_s12 = smov 0   ;;  %s4908_s13 = smov 0  }
   0x2   :  { %s4910_s14 = smov 0   ;;  %s4912_s15 = smov 0  }
   0x3   :  { %s4914_s16 = smov 0   ;;  %s4916_s17 = smov 0  }
   0x4 LB: > { %s3296_s18 = sadd.s32 4294967295, %s4880_s17   ;;  %s3297_s19 = sadd.s32 4294967294, %s4880_s17   ;;  %s4880_s17 = sphi %s4916_s17, %s16_s17   ;;  %s4876_s16 = sphi %s4914_s16, %s5760_s16   ;;  %s4872_s15 = sphi %s4912_s15, %s5759_s15   ;;  %s4868_s14 = sphi %s4910_s14, %s5758_s14   ;;  %s4864_s13 = sphi %s4908_s13, %s5757_s13   ;;  %s4860_s12 = sphi %s4906_s12, %s5756_s12  }
   0x5   : > { %s28_s20 = sadd.s32 1, %s4876_s16  ;;  %s115_s21 = sadd.s32 1, %s4868_s14 }
   0x6   : > { %p30_p0 = scmp.ge.s32.totalorder %s28_s20, 2  ;;  %p125_p1 = scmp.ne.s32.totalorder %s4868_s14, %s4864_s13 }
   0x7   : > { %p126_p2 = scmp.eq.s32.totalorder %s3296_s18, 1  ;;  %p131_p3 = scmp.ne.s32.totalorder %s4864_s13, %s4860_s12 }
   0x8   : > { %s5762_s20 = smov (%p30_p0, %s28_s20), 0  ;;  %p132_p5 = scmp.eq.s32.totalorder %s3297_s19, 1 }
   0x9   : > { %p4946_p4 = por %p126_p2, %p125_p1  ;;  %s110_s23 = ssub.s32 %s4876_s16, %s5762_s20 }
   0xa   : > { %p3302_p6 = scmp.ge.s32.totalorder %s4880_s17, 1  ;;  %p113_p7 = scmp.eq.s32.totalorder %s110_s23, 0 }
   0xb   : > { %p4953_p8 = por %p132_p5, %p131_p3  ;;  %p171_p9 = scmp.lt.s32.totalorder %s4880_s17, 3 }
   0xc   : > { %s4959_s25 = scalar_select %p113_p7, %s4868_s14, %s115_s21  }
   0xd   : > { %p172_p10 = pnand %p3302_p6, %p171_p9 }
   0xe   : > { %v4682_v0 = vld [vmem:[%s5751_s1 + $0x40] sm:$0xff] (!%p172_p10)   ;;  %v4882_v2 = vmov (!%p172_p10), 0   ;;  %v4684_v4 = vld [vmem:[%s5751_s1 + $0x48] sm:$0xff] (!%p172_p10)   ;;  %p202_p11 = scmp.lt.s32.totalorder (!%p172_p10), %s4872_s15, 1  ;;  %v4686_v6 = vld [vmem:[%s5751_s1 + $0x50] sm:$0xff] (!%p172_p10)   ;;  %vm1064_vm1 = vcmask (!%p172_p10), 1046528  }
   0xf   : > { %175 = sbr.rel (%p172_p10) target bundleno = 566 (0x236), region = 32  ;;  %v4683_v1 = vld [vmem:[%s5751_s1 + $0x100] sm:$0xff] (!%p172_p10)   ;;  %v4968_v3 = vrot.slane (!%p172_p10), %v4882_v2, 1  ;;  %3919 = vmatprep.subr.bf16.mxu1 (!%p172_p10), %v4682_v0  ;;  %v4685_v5 = vld [vmem:[%s5751_s1 + $0x108] sm:$0xff] (!%p172_p10)   ;;  %v4687_v7 = vld [vmem:[%s5751_s1 + $0x110] sm:$0xff] (!%p172_p10)   ;;  %s199_s30 = sand.u32 (!%p172_p10), 1, %s4864_s13  }
  0x10   : > { %4111 = vmatprep.subr.bf16.mxu0 (!%p172_p10), %v4683_v1  ;;  %3920 = vmatpush3.bf16.msra.mxu1 (!%p172_p10), %v4682_v0  ;;  %v4688_v8 = vld [vmem:[%s5751_s1 + $0x58] sm:$0xff] (!%p172_p10)   ;;  %v4690_v10 = vld [vmem:[%s5751_s1 + $0x60] sm:$0xff] (!%p172_p10)   ;;  %v4692_v12 = vld [vmem:[%s5751_s1 + $0x68] sm:$0xff] (!%p172_p10)   ;;  %vm423_vm0 = vsmask.f32 (!%p172_p10), 7424  ;;  %s3303_s4 = sshll.u32 (!%p172_p10), %s199_s30, 7 }
  0x11   : > { %4112 = vmatpush3.bf16.msra.mxu0 (!%p172_p10), %v4683_v1  ;;  %3921 = vmatprep.subr.bf16.mxu1 (!%p172_p10), %v4684_v4  ;;  %v4689_v9 = vld [vmem:[%s5751_s1 + $0x118] sm:$0xff] (!%p172_p10)   ;;  %v4691_v11 = vld [vmem:[%s5751_s1 + $0x120] sm:$0xff] (!%p172_p10)   ;;  %v4693_v13 = vld [vmem:[%s5751_s1 + $0x128] sm:$0xff] (!%p172_p10)   ;;  %s5643_s5 = scalar_lea.vmem (!%p172_p10), [#allocation2], %s3303_s4  ;;  %s3607_s7 = sshll.u32 (!%p172_p10), %s4872_s15, 11 }
  0x12   : > { %4113 = vmatprep.subr.bf16.mxu0 (!%p172_p10), %v4685_v5  ;;  %3935 = vmatprep.mubr.bf16.mxu1 (!%p172_p10), %v4968_v3  ;;  %v4694_v16 = vld [vmem:[%s5751_s1 + $0x70] sm:$0xff] (!%p172_p10)   ;;  %v4696_v25 = vld [vmem:[%s5751_s1 + $0x78] sm:$0xff] (!%p172_p10)   ;;  %v4700_v35 = vld [vmem:[%s5751_s1] sm:$0xff] (!%p172_p10)   ;;  %s3197_s8 = sshll.u32 (!%p172_p10), %s5643_s5, 4  ;;  %s4883_s19 = smov (!%p172_p10), [#allocation2]   ;;  %s5698_s8 = int_to_ptr.vmem [resolvable:$true] %s3197_s8 }
  0x13   : > { %v4695_v21 = vld [vmem:[%s5751_s1 + $0x130] sm:$0xff] (!%p172_p10)   ;;  %v4697_v32 = vld [vmem:[%s5751_s1 + $0x138] sm:$0xff] (!%p172_p10)   ;;  %v4703_v44 = vld [vmem:[%s5751_s1 + $0x140] sm:$0xff] (!%p172_p10)   ;;  %s4802_s18 = scalar_lea.vmem (!%p172_p10), %s5698_s8, 2048  ;;  %s4806_s21 = sshll.u32 (!%p172_p10), %s4883_s19, 4  ;;  %s4807_s21 = int_to_ptr.vmem [resolvable:$false] %s4806_s21 }
  0x14   : > { %3922 = vmatpush3.bf16.msra.mxu1 (!%p172_p10), %v4684_v4  ;;  %v4704_v49 = vld [vmem:[%s5751_s1 + $0x148] sm:$0xff] (!%p172_p10)   ;;  %v4714_v61 = vld [vmem:[%s5751_s1 + $0x10] sm:$0xff] (!%p172_p10)   ;;  %p4803_p12 = scmp.ne.s32.totalorder (!%p172_p10), %s5698_s8, %s4802_s18  ;;  %s4808_s23 = scalar_lea.vmem (!%p172_p10), %s4807_s21, 4096 }
  0x15   : > { %4114 = vmatpush3.bf16.msra.mxu0 (!%p172_p10), %v4685_v5  ;;  %3923 = vmatprep.subr.bf16.mxu1 (!%p172_p10), %v4686_v6  ;;  %v4707_v53 = vld [vmem:[%s5751_s1 + $0x8] sm:$0xff] (!%p172_p10)   ;;  %v4710_v4 = vld [vmem:[%s5751_s1 + $0x150] sm:$0xff] (!%p172_p10)   ;;  %p4809_p1 = scmp.lt.s32.totalorder (!%p172_p10), %s5698_s8, %s4807_s21  ;;  %p4810_p2 = scmp.lt.s32.totalorder (!%p172_p10), %s4808_s23, %s4802_s18 }
  0x16   : > { %s203_s11 = scalar_select %p202_p11, %s4872_s15, 1  ;;  %4115 = vmatprep.subr.bf16.mxu0 %v4687_v7 }
  0x17   : > { %s5704_s15 = scalar_lea.sflag [#allocation3], %s199_s30  ;;  %p4804_p13 = pnand %p4803_p12, %p4946_p4 }
  0x18   : > { %s4623_s26 = smul.u32 192, %s203_s11  ;;  %3924 = vmatpush3.bf16.msra.mxu1 %v4686_v6  ;;  %s5696_s11 = scalar_lea.hbm %s5753_s3, %s3607_s7 }
  0x19   : > { %4116 = vmatpush3.bf16.msra.mxu0 %v4687_v7  ;;  %3925 = vmatprep.subr.bf16.mxu1 %v4688_v8  ;;  %p4805_p0 = pneg %p4804_p13  ;;  %p4811_p3 = por %p4810_p2, %p4809_p1 }
  0x1a   : > { %4117 = vmatprep.subr.bf16.mxu0 %v4689_v9  ;;  %s5000_s6 = scalar_lea.vmem %s5750_s0, %s4623_s26 }
  0x1b   : > { %v5009_v14 = vld [vmem:[%s5000_s6] sm:$0xff]   ;;  %v5012_v15 = vld [vmem:[%s5000_s6 + $0x8] ss:$0 sps:$4 sm:$0x11]   ;;  %v5021_v20 = vld [vmem:[%s5000_s6 + $0xc] sm:$0xff]   ;;  %p4812_p5 = pnand %p4811_p3, %p4805_p0 }
  0x1c   : > { %3926 = vmatpush3.bf16.msra.mxu1 %v4688_v8  ;;  %v433_v17 = vshrl.u32 %v5009_v14, 16  ;;  %v435_v18 = vshll.u32 %v5009_v14, 16  ;;  %v440_v19 = vshll.u32 %v5012_v15, 16  ;;  %v5027_v24 = vld [vmem:[%s5000_s6 + $0x14] ss:$0 sps:$4 sm:$0x11]  }
  0x1d   : > { %4118 = vmatpush3.bf16.msra.mxu0 %v4689_v9  ;;  %3927 = vmatprep.subr.bf16.mxu1 %v4690_v10  ;;  %v447_v26 = vshll.u32 %v5021_v20, 16  ;;  %v445_v28 = vshrl.u32 %v5021_v20, 16  ;;  %v452_v29 = vshll.u32 %v5027_v24, 16  ;;  %v5036_v31 = vld [vmem:[%s5000_s6 + $0x18] sm:$0xff]   ;;  %v5051_v38 = vld [vmem:[%s5000_s6 + $0x24] sm:$0xff]   ;;  %v5062_v48 = vld [vmem:[%s5000_s6 + $0x30] sm:$0xff]  }
  0x1e   : > { %4119 = vmatprep.subr.bf16.mxu0 %v4691_v11  ;;  %v437_v22 = vrot.slane %v435_v18, 1  ;;  %v442_v23 = vrot.slane %v440_v19, 1  ;;  %v5043_v34 = vld [vmem:[%s5000_s6 + $0x20] ss:$0 sps:$4 sm:$0x11]   ;;  %v457_v36 = vshrl.u32 %v5036_v31, 16 }
  0x1f   : > { %v449_v30 = vrot.slane %v447_v26, 1  ;;  %v459_v37 = vshll.u32 %v5036_v31, 16  ;;  %v454_v39 = vrot.slane %v452_v29, 1  ;;  %v464_v40 = vshll.u32 %v5043_v34, 16  ;;  %v5089_v62 = vld [vmem:[%s5000_s6 + $0x3c] sm:$0xff]   ;;  %v5101_v8 = vld [vmem:[%s5000_s6 + $0x48] sm:$0xff]  }
  0x20   : > { %3928 = vmatpush3.bf16.msra.mxu1 %v4690_v10  ;;  %v438_v27 = vor.u32 %v437_v22, %v433_v17  ;;  %v5055_v43 = vld [vmem:[%s5000_s6 + $0x2c] ss:$0 sps:$4 sm:$0x11]   ;;  %v471_v45 = vshll.u32 %v5051_v38, 16  ;;  %v469_v50 = vshrl.u32 %v5051_v38, 16  ;;  %v481_v55 = vshrl.u32 %v5062_v48, 16 }
  0x21   : > { %4120 = vmatpush3.bf16.msra.mxu0 %v4691_v11  ;;  %3929 = vmatprep.subr.bf16.mxu1 %v4692_v12  ;;  %v450_v41 = vor.u32 %v449_v30, %v445_v28  ;;  %v461_v42 = vrot.slane %v459_v37, 1  ;;  %v466_v47 = vrot.slane %v464_v40, 1  ;;  %v476_v51 = vshll.u32 %v5055_v43, 16  ;;  %v5077_v56 = vld [vmem:[%s5000_s6 + $0x38] ss:$0 sps:$4 sm:$0x11]  }
  0x22   : > { %4121 = vmatprep.subr.bf16.mxu0 %v4693_v13  ;;  %v443_v33 = vsel %vm423_vm0, %v438_v27, %v442_v23  ;;  %v473_v54 = vrot.slane %v471_v45, 1  ;;  %v483_v57 = vshll.u32 %v5062_v48, 16  ;;  %v488_v60 = vshll.u32 %v5077_v56, 16  ;;  %v5093_v1 = vld [vmem:[%s5000_s6 + $0x44] ss:$0 sps:$4 sm:$0x11]  }
  0x23   : > { %4127 = vmatprep.mubr.bf16.mxu0 %v443_v33  ;;  %v462_v46 = vor.u32 %v461_v42, %v457_v36  ;;  %v5070_v52 = vsel %vm423_vm0, %v450_v41, %v454_v39  ;;  %v478_v0 = vrot.slane %v476_v51, 1  ;;  %v495_v7 = vshll.u32 %v5089_v62, 16  ;;  %v4711_v10 = vld [vmem:[%s5751_s1 + $0x158] sm:$0xff]   ;;  %v4717_v30 = vld [vmem:[%s5751_s1 + $0x160] sm:$0xff]   ;;  %v4718_v42 = vld [vmem:[%s5751_s1 + $0x168] sm:$0xff]  }
  0x24   : > { %3930 = vmatpush3.bf16.msra.mxu1 %v4692_v12  ;;  %v485_v59 = vrot.slane %v483_v57, 1  ;;  %v474_v63 = vor.u32 %v473_v54, %v469_v50  ;;  %v490_v6 = vrot.slane %v488_v60, 1  ;;  %v493_v9 = vshrl.u32 %v5089_v62, 16  ;;  %v4721_v23 = vld [vmem:[%s5751_s1 + $0x18] sm:$0xff]   ;;  %v4728_v41 = vld [vmem:[%s5751_s1 + $0x20] sm:$0xff]  }
  0x25   : > { %4122 = vmatpush3.bf16.msra.mxu0 %v4693_v13  ;;  %3931 = vmatprep.subr.bf16.mxu1 %v4694_v16  ;;  %v5081_v58 = vsel %vm423_vm0, %v462_v46, %v466_v47  ;;  %v497_v11 = vrot.slane %v495_v7, 1  ;;  %v500_v12 = vshll.u32 %v5093_v1, 16  ;;  %v505_v17 = vshrl.u32 %v5101_v8, 16  ;;  %v5131_v28 = vld [vmem:[%s5000_s6 + $0x5c] ss:$0 sps:$4 sm:$0x11]  }
  0x26   : > { %4123 = vmatprep.subr.bf16.mxu0 %v4695_v21  ;;  %v486_v5 = vor.u32 %v485_v59, %v481_v55  ;;  %v5109_v13 = vsel %vm423_vm0, %v474_v63, %v478_v0  ;;  %v507_v19 = vshll.u32 %v5101_v8, 16  ;;  %v524_v40 = vshll.u32 %v5131_v28, 16  ;;  %v5155_v45 = vld [vmem:[%s5000_s6 + $0x68] ss:$0 sps:$4 sm:$0x11]   ;;  %v4724_v46 = vld [vmem:[%s5751_s1 + $0x170] sm:$0xff]  }
  0x27   : > { %v498_v27 = vor.u32 %v497_v11, %v493_v9  ;;  %v1067_v54 = vrot.slane %v5009_v14, 1  ;;  %v1068_v55 = vrot.slane %v5012_v15, 1  ;;  %v1070_v60 = vrot.slane %v5021_v20, 1  ;;  %v4725_v63 = vld [vmem:[%s5751_s1 + $0x178] sm:$0xff]   ;;  %v4734_v9 = vld [vmem:[%s5751_s1 + $0x28] sm:$0xff]  }
  0x28   : > { %3932 = vmatpush3.bf16.msra.mxu1 %v4694_v16  ;;  %v5112_v16 = vld [vmem:[%s5000_s6 + $0x50] ss:$0 sps:$4 sm:$0x11]   ;;  %v5116_v18 = vsel %vm423_vm0, %v486_v5, %v490_v6  ;;  %v509_v26 = vrot.slane %v507_v19, 1  ;;  %v526_v51 = vrot.slane %v524_v40, 1  ;;  %v1071_v11 = vrot.slane %v5027_v24, 1 }
  0x29   : > { %4124 = vmatpush3.bf16.msra.mxu0 %v4695_v21  ;;  %3933 = vmatprep.subr.bf16.mxu1 %v4696_v25  ;;  %v5120_v21 = vld [vmem:[%s5000_s6 + $0x54] sm:$0xff]   ;;  %v512_v22 = vshll.u32 %v5112_v16, 16  ;;  %v5201_v19 = vld [vmem:[%s5000_s6 + $0x84] sm:$0xff]  }
  0x2a   : > { %4125 = vmatprep.subr.bf16.mxu0 %v4697_v32  ;;  %v519_v29 = vshll.u32 %v5120_v21, 16  ;;  %v517_v37 = vshrl.u32 %v5120_v21, 16  ;;  %v4729_v24 = vld [vmem:[%s5751_s1 + $0x180] sm:$0xff]   ;;  %v565_v40 = vshrl.u32 %v5201_v19, 16 }
  0x2c   : > { %3934 = vmatpush3.bf16.msra.mxu1 %v4696_v25  ;;  %v502_v25 = vrot.slane %v500_v12, 1  ;;  %v521_v39 = vrot.slane %v519_v29, 1  ;;  %v5196_v12 = vld [vmem:[%s5000_s6 + $0x80] ss:$0 sps:$4 sm:$0x11]   ;;  %v1074_v29 = vrot.slane %v5043_v34, 1 }
  0x2d   : > { %4126 = vmatpush3.bf16.msra.mxu0 %v4697_v32  ;;  %3967 = vmatprep.subr.bf16.mxu1 %v4700_v35  ;;  %v510_v32 = vor.u32 %v509_v26, %v505_v17 }
  0x2e   : > { %4159 = vmatprep.subr.bf16.mxu0 %v4703_v44  ;;  %v5141_v36 = vsel %vm423_vm0, %v498_v27, %v502_v25  ;;  %v522_v50 = vor.u32 %v521_v39, %v517_v37  ;;  %v1073_v25 = vrot.slane %v5036_v31, 1  ;;  %v560_v39 = vshll.u32 %v5196_v12, 16 }
  0x2f   : > { %3936 = vmatmul.mubr.bf16.vlgmr.msra.gmra.mrb[0].mxu1 %v443_v33  ;;  %v514_v33 = vrot.slane %v512_v22, 1 }
  0x30   : > { %4128 = vmatmul.mubr.bf16.vlgmr.msra.gmra.mrb[0].mxu0 %v5070_v52  ;;  %3968 = vmatpush3.bf16.msra.mxu1 %v4700_v35  ;;  %v5138_v35 = vld [vmem:[%s5000_s6 + $0x60] sm:$0xff]   ;;  %v5186_v6 = vsel %vm423_vm0, %v522_v50, %v526_v51 }
  0x31   : > { %4160 = vmatpush3.bf16.msra.mxu0 %v4703_v44  ;;  %3939 = vmatprep.mubr.bf16.mxu1 %v5070_v52  ;;  %v5152_v44 = vsel %vm423_vm0, %v510_v32, %v514_v33  ;;  %v531_v47 = vshll.u32 %v5138_v35, 16  ;;  %v529_v57 = vshrl.u32 %v5138_v35, 16  ;;  %v567_v32 = vshll.u32 %v5201_v19, 16 }
  0x32   : > { %4161 = vmatprep.subr.bf16.mxu0 %v4704_v49  ;;  %4131 = vmatprep.mubr.bf16.mxu0 %v5081_v58 }
  0x33   : > { %3969 = vmatprep.subr.bf16.mxu1 %v4707_v53  ;;  %v533_v0 = vrot.slane %v531_v47, 1  ;;  %v569_v34 = vrot.slane %v567_v32, 1  ;;  %v5228_v47 = vsel %vm1064_vm1, %v1070_v60, %v1071_v11  ;;  %v1077_v60 = vrot.slane %v5055_v43, 1 }
  0x34   : > { %3970 = vmatpush3.bf16.msra.mxu1 %v4707_v53  ;;  %v5169_v53 = vld [vmem:[%s5000_s6 + $0x74] ss:$0 sps:$4 sm:$0x11]  }
  0x35   : > { %4162 = vmatpush3.bf16.msra.mxu0 %v4704_v49  ;;  %3971 = vmatprep.subr.bf16.mxu1 %v4714_v61  ;;  %v5165_v49 = vld [vmem:[%s5000_s6 + $0x6c] sm:$0xff]   ;;  %v548_v5 = vshll.u32 %v5169_v53, 16  ;;  %v534_v22 = vor.u32 %v533_v0, %v529_v57  ;;  %v1076_v57 = vrot.slane %v5051_v38, 1 }
  0x36   : > { %4163 = vmatprep.subr.bf16.mxu0 %v4710_v4  ;;  %v543_v59 = vshll.u32 %v5165_v49, 16  ;;  %v541_v15 = vshrl.u32 %v5165_v49, 16 }
  0x37   : > { %3940 = vmatmul.mubr.bf16.gmra.mrb[4].mxu1 %v5081_v58  ;;  %v550_v27 = vrot.slane %v548_v5, 1  ;;  %v5275_v32 = vsel %vm1064_vm1, %v1076_v57, %v1077_v60 }
  0x38   : > { %4132 = vmatmul.mubr.bf16.gmra.mrb[4].mxu0 %v5109_v13  ;;  %3943 = vmatprep.mubr.bf16.mxu1 %v5109_v13  ;;  %v545_v7 = vrot.slane %v543_v59, 1  ;;  %v4735_v59 = vld [vmem:[%s5751_s1 + $0x188] sm:$0xff]  }
  0x39   : > { %4164 = vmatpush3.bf16.msra.mxu0 %v4710_v4  ;;  %4135 = vmatprep.mubr.bf16.mxu0 %v5116_v18  ;;  %v536_v4 = vshll.u32 %v5155_v45, 16 }
  0x3a   : > { %4165 = vmatprep.subr.bf16.mxu0 %v4711_v10  ;;  %3972 = vmatpush3.bf16.msra.mxu1 %v4714_v61  ;;  %v5177_v61 = vld [vmem:[%s5000_s6 + $0x78] sm:$0xff]   ;;  %v546_v26 = vor.u32 %v545_v7, %v541_v15  ;;  %v1079_v15 = vrot.slane %v5062_v48, 1  ;;  %v5254_v7 = vld [vmem:[%s5000_s6 + $0xa4] ss:$0 sps:$4 sm:$0x11]  }
  0x3b   : > { %3973 = vmatprep.subr.bf16.mxu1 %v4721_v23  ;;  %v555_v17 = vshll.u32 %v5177_v61, 16  ;;  %v553_v33 = vshrl.u32 %v5177_v61, 16 }
  0x3c   : > { %v5231_v50 = vsel %vm423_vm0, %v546_v26, %v550_v27 }
  0x3d   : > { %4166 = vmatpush3.bf16.msra.mxu0 %v4711_v10  ;;  %v5192_v10 = vsel %vm1064_vm1, %v1067_v54, %v1068_v55  ;;  %v557_v37 = vrot.slane %v555_v17, 1  ;;  %v5235_v54 = vld [vmem:[%s5000_s6 + $0x98] ss:$0 sps:$4 sm:$0x11]   ;;  %v5238_v55 = vsel %vm1064_vm1, %v1073_v25, %v1074_v29  ;;  %v1080_v17 = vrot.slane %v5077_v56, 1  ;;  %v5269_v29 = vld [vmem:[%s5000_s6 + $0xa8] sm:$0xff]  }
  0x3e   : > { %4167 = vmatprep.subr.bf16.mxu0 %v4717_v30  ;;  %3974 = vmatpush3.bf16.msra.mxu1 %v4721_v23  ;;  %v538_v23 = vrot.slane %v536_v4, 1  ;;  %v562_v4 = vrot.slane %v560_v39, 1  ;;  %v4746_v56 = vld [vmem:[%s5751_s1 + $0x38] sm:$0xff]   ;;  %v596_v39 = vshll.u32 %v5254_v7, 16 }
  0x3f   : > { %3944 = vmatmul.mubr.bf16.gmra.mrb[8].mxu1 %v5116_v18  ;;  %3975 = vmatprep.subr.bf16.mxu1 %v4728_v41  ;;  %v558_v0 = vor.u32 %v557_v37, %v553_v33 }
  0x40   : > { %4136 = vmatmul.mubr.bf16.gmra.mrb[8].mxu0 %v5141_v36  ;;  %3947 = vmatprep.mubr.bf16.mxu1 %v5141_v36 }
  0x41   : > { %4168 = vmatpush3.bf16.msra.mxu0 %v4717_v30  ;;  %4139 = vmatprep.mubr.bf16.mxu0 %v5152_v44  ;;  %v5212_v30 = vld [vmem:[%s5000_s6 + $0x8c] ss:$0 sps:$4 sm:$0x11]   ;;  %v5264_v25 = vsel %vm423_vm0, %v558_v0, %v562_v4  ;;  %v5296_v0 = vld [vmem:[%s5000_s6 + $0xb0] ss:$0 sps:$4 sm:$0x11]  }
  0x42   : > { %4169 = vmatprep.subr.bf16.mxu0 %v4718_v42  ;;  %3976 = vmatpush3.bf16.msra.mxu1 %v4728_v41  ;;  %v5219_v41 = vld [vmem:[%s5000_s6 + $0x90] sm:$0xff]   ;;  %v572_v51 = vshll.u32 %v5212_v30, 16 }
  0x43   : > { %3977 = vmatprep.subr.bf16.mxu1 %v4734_v9  ;;  %v579_v5 = vshll.u32 %v5219_v41, 16 }
  0x44   : > { %v574_v43 = vrot.slane %v572_v51, 1  ;;  %v4747_v51 = vld [vmem:[%s5751_s1 + $0x198] sm:$0xff]  }
  0x45   : > { %4170 = vmatpush3.bf16.msra.mxu0 %v4718_v42  ;;  %v5222_v42 = vsel %vm423_vm0, %v534_v22, %v538_v23  ;;  %v4741_v22 = vld [vmem:[%s5751_s1 + $0x190] sm:$0xff]   ;;  %v584_v23 = vshll.u32 %v5235_v54, 16  ;;  %v581_v26 = vrot.slane %v579_v5, 1  ;;  %v1085_v5 = vrot.slane %v5101_v8, 1 }
  0x46   : > { %4171 = vmatprep.subr.bf16.mxu0 %v4724_v46  ;;  %3978 = vmatpush3.bf16.msra.mxu1 %v4734_v9  ;;  %v570_v9 = vor.u32 %v569_v34, %v565_v40  ;;  %v5282_v40 = vsel %vm1064_vm1, %v1079_v15, %v1080_v17  ;;  %v1082_v34 = vrot.slane %v5089_v62, 1  ;;  %v598_v15 = vrot.slane %v596_v39, 1 }
  0x47   : > { %3948 = vmatmul.mubr.bf16.gmra.mrb[12].mxu1 %v5152_v44  ;;  %v586_v57 = vrot.slane %v584_v23, 1  ;;  %v601_v17 = vshrl.u32 %v5269_v29, 16  ;;  %v1088_v39 = vrot.slane %v5120_v21, 1 }
  0x48   : > { %4140 = vmatmul.mubr.bf16.gmra.mrb[12].mxu0 %v5186_v6  ;;  %3951 = vmatprep.mubr.bf16.mxu1 %v5186_v6  ;;  %v5278_v33 = vsel %vm423_vm0, %v570_v9, %v574_v43  ;;  %v1086_v9 = vrot.slane %v5112_v16, 1  ;;  %v4749_v43 = vld [vmem:[%s5751_s1 + $0x1a0] sm:$0xff]  }
  0x49   : > { %4172 = vmatpush3.bf16.msra.mxu0 %v4724_v46  ;;  %4175 = vmatprep.mubr.bf16.mxu0 %v5192_v10  ;;  %v4740_v46 = vld [vmem:[%s5751_s1 + $0x30] sm:$0xff]  }
  0x4a   : > { %4173 = vmatprep.subr.bf16.mxu0 %v4725_v63  ;;  %3979 = vmatprep.subr.bf16.mxu1 %v4740_v46 }
  0x4b   : > { %3980 = vmatpush3.bf16.msra.mxu1 %v4740_v46  ;;  %v1083_v46 = vrot.slane %v5093_v1, 1  ;;  %v603_v1 = vshll.u32 %v5269_v29, 16 }
  0x4c   : > { %3981 = vmatprep.subr.bf16.mxu1 %v4746_v56 }
  0x4d   : > { %4174 = vmatpush3.bf16.msra.mxu0 %v4725_v63  ;;  %v5247_v63 = vld [vmem:[%s5000_s6 + $0x9c] sm:$0xff]   ;;  %v605_v23 = vrot.slane %v603_v1, 1 }
  0x4e   : > { %4207 = vmatprep.subr.bf16.mxu0 %v4729_v24  ;;  %v591_v11 = vshll.u32 %v5247_v63, 16  ;;  %v589_v27 = vshrl.u32 %v5247_v63, 16 }
  0x4f   : > { %3952 = vmatmul.mubr.bf16.gmra.mrb[16].mxu1 %v5222_v42 }
  0x50   : > { %4176 = vmatmul.mubr.bf16.vlgmr.msra.gmra.mrb[0].mxu0 %v5228_v47  ;;  %3955 = vmatprep.mubr.bf16.mxu1 %v5231_v50  ;;  %v593_v37 = vrot.slane %v591_v11, 1 }
  0x51   : > { %4208 = vmatpush3.bf16.msra.mxu0 %v4729_v24  ;;  %4179 = vmatprep.mubr.bf16.mxu0 %v5238_v55  ;;  %v577_v24 = vshrl.u32 %v5219_v41, 16 }
  0x52   : > { %4209 = vmatprep.subr.bf16.mxu0 %v4735_v59  ;;  %v594_v4 = vor.u32 %v593_v37, %v589_v27  ;;  %3982 = vmatpush3.bf16.msra.mxu1 %v4746_v56  ;;  %v4751_v27 = vld [vmem:[%s5751_s1 + $0x1a8] sm:$0xff]   ;;  %v606_v56 = vor.u32 %v605_v23, %v601_v17 }
  0x53   : > { %v582_v60 = vor.u32 %v581_v26, %v577_v24  ;;  %v5311_v24 = vsel %vm1064_vm1, %v1082_v34, %v1083_v46  ;;  %v5317_v26 = vsel %vm1064_vm1, %v1085_v5, %v1086_v9  ;;  %v1089_v34 = vrot.slane %v5131_v28, 1  ;;  %v4757_v28 = vld [vmem:[%s5751_s1 + $0x1b8] sm:$0xff]  }
  0x54   : > { %v5314_v16 = vsel %vm423_vm0, %v594_v4, %v598_v15  ;;  %v1091_v46 = vrot.slane %v5138_v35, 1  ;;  %v1095_v15 = vrot.slane %v5169_v53, 1  ;;  %v1097_v5 = vrot.slane %v5177_v61, 1  ;;  %v4750_v53 = vld [vmem:[%s5751_s1 + $0x88] sm:$0xff]  }
  0x55   : > { %4210 = vmatpush3.bf16.msra.mxu0 %v4735_v59  ;;  %v4748_v59 = vld [vmem:[%s5751_s1 + $0x80] sm:$0xff]   ;;  %v5306_v11 = vsel %vm423_vm0, %v582_v60, %v586_v57  ;;  %v4753_v57 = vld [vmem:[%s5751_s1 + $0x1b0] sm:$0xff]   ;;  %v5337_v1 = vsel %vm1064_vm1, %v1088_v39, %v1089_v34  ;;  %v1098_v9 = vrot.slane %v5196_v12, 1  ;;  %v1100_v12 = vrot.slane %v5201_v19, 1 }
  0x56   : > { %4211 = vmatprep.subr.bf16.mxu0 %v4741_v22  ;;  %4015 = vmatprep.subr.bf16.mxu1 %v4748_v59  ;;  %v1107_v39 = vrot.slane %v5254_v7, 1  ;;  %v1109_v34 = vrot.slane %v5269_v29, 1 }
  0x57   : > { %3956 = vmatmul.mubr.bf16.gmra.mrb[20].mxu1 %v5264_v25  ;;  %v5362_v23 = vsel %vm1064_vm1, %v1097_v5, %v1098_v9  ;;  %v4762_v9 = vld [vmem:[%s5751_s1 + $0xb0] sm:$0xff]  }
  0x58   : > { %4180 = vmatmul.mubr.bf16.gmra.mrb[4].mxu0 %v5275_v32  ;;  %3959 = vmatprep.mubr.bf16.mxu1 %v5278_v33 }
  0x59   : > { %4183 = vmatprep.mubr.bf16.mxu0 %v5282_v40  ;;  %4212 = vmatpush3.bf16.msra.mxu0 %v4741_v22  ;;  %v608_v22 = vshll.u32 %v5296_v0, 16 }
  0x5a   : > { %4213 = vmatprep.subr.bf16.mxu0 %v4747_v51 }
  0x5b   : > { %v610_v37 = vrot.slane %v608_v22, 1  ;;  %v1101_v22 = vrot.slane %v5212_v30, 1  ;;  %v4754_v30 = vld [vmem:[%s5751_s1 + $0x98] sm:$0xff]  }
  0x5d   : > { %4214 = vmatpush3.bf16.msra.mxu0 %v4747_v51  ;;  %v1092_v51 = vrot.slane %v5155_v45, 1  ;;  %v5334_v60 = vsel %vm423_vm0, %v606_v56, %v610_v37  ;;  %v1094_v45 = vrot.slane %v5165_v49, 1  ;;  %v1103_v56 = vrot.slane %v5219_v41, 1 }
  0x5e   : > { %4215 = vmatprep.subr.bf16.mxu0 %v4749_v43 }
  0x5f   : > { %3960 = vmatmul.mubr.bf16.gmra.mrb[24].mxu1 %v5306_v11  ;;  %v5340_v4 = vsel %vm1064_vm1, %v1091_v46, %v1092_v51  ;;  %v5359_v17 = vsel %vm1064_vm1, %v1094_v45, %v1095_v15  ;;  %v1110_v46 = vrot.slane %v5296_v0, 1  ;;  %v4758_v51 = vld [vmem:[%s5751_s1 + $0xa0] sm:$0xff]   ;;  %v5406_v45 = vld [vmem:[%s5000_s6 + $0xbc] ss:$0 sps:$4 sm:$0x11]   ;;  %v4760_v0 = vld [vmem:[%s5751_s1 + $0xa8] sm:$0xff]  }
  0x60   : > { %4184 = vmatmul.mubr.bf16.gmra.mrb[8].mxu0 %v5311_v24  ;;  %3963 = vmatprep.mubr.bf16.mxu1 %v5314_v16  ;;  %v1916_v5 = vrot.slane %v5406_v45, 1 }
  0x61   : > { %4187 = vmatprep.mubr.bf16.mxu0 %v5317_v26  ;;  %4216 = vmatpush3.bf16.msra.mxu0 %v4749_v43  ;;  %v5356_v43 = vld [vmem:[%s5751_s1 + $0x1c0] sm:$0xff]   ;;  %v5409_v7 = vsel %vm1064_vm1, %v1109_v34, %v1110_v46  ;;  %v4777_v34 = vld [vmem:[%s5751_s1 + $0x208] sm:$0xff]  }
  0x62   : > { %4217 = vmatprep.subr.bf16.mxu0 %v4751_v27  ;;  %v4786_v46 = vld [vmem:[%s5751_s1 + $0x100] sm:$0xff]  }
  0x65   : > { %4218 = vmatpush3.bf16.msra.mxu0 %v4751_v27  ;;  %v4752_v27 = vld [vmem:[%s5751_s1 + $0x90] sm:$0xff]  }
  0x66   : > { %4219 = vmatprep.subr.bf16.mxu0 %v4753_v57 }
  0x67   : > { %3964 = vmatmul.mubr.bf16.gmra.mrb[28].mxu1 %v5334_v60 }
  0x68   : > { %4188 = vmatmul.mubr.bf16.gmra.mrb[12].mxu0 %v5337_v1  ;;  %3983 = vmatprep.mubr.bf16.mxu1 %v4882_v2 }
  0x69   : > { %4191 = vmatprep.mubr.bf16.mxu0 %v5340_v4  ;;  %4220 = vmatpush3.bf16.msra.mxu0 %v4753_v57 }
  0x6a   : > { %4221 = vmatprep.subr.bf16.mxu0 %v4757_v28 }
  0x6d   : > { %4222 = vmatpush3.bf16.msra.mxu0 %v4757_v28  ;;  %v5403_v28 = vld [vmem:[%s5000_s6 + $0xb4] sm:$0xff]  }
  0x6e   : > { %4255 = vmatprep.subr.bf16.mxu0 %v5356_v43  ;;  %v1915_v15 = vrot.slane %v5403_v28, 1 }
  0x6f   : > { %3984 = vmatmul.mubr.bf16.vlgmr.msra.gmra.mrb[0].mxu1 %v5009_v14  ;;  %v1104_v14 = vrot.slane %v5235_v54, 1  ;;  %v1106_v54 = vrot.slane %v5247_v63, 1 }
  0x70   : > { %4192 = vmatmul.mubr.bf16.gmra.mrb[16].mxu0 %v5359_v17  ;;  %4016 = vmatpush3.bf16.msra.mxu1 %v4748_v59  ;;  %v5380_v59 = vsel %vm1064_vm1, %v1100_v12, %v1101_v22  ;;  %v4764_v12 = vld [vmem:[%s5751_s1 + $0xb8] sm:$0xff]   ;;  %v4766_v22 = vld [vmem:[%s5751_s1 + $0xc0] sm:$0xff]  }
  0x71   : > { %3987 = vmatprep.mubr.bf16.mxu1 %v5021_v20  ;;  %4195 = vmatprep.mubr.bf16.mxu0 %v5362_v23  ;;  %v5383_v37 = vsel %vm1064_vm1, %v1103_v56, %v1104_v14  ;;  %v5400_v57 = vsel %vm1064_vm1, %v1106_v54, %v1107_v39  ;;  %v4765_v56 = vld [vmem:[%s5751_s1 + $0x1d8] sm:$0xff]   ;;  %v4778_v54 = vld [vmem:[%s5751_s1 + $0xf0] sm:$0xff]  }
  0x72   : > { %4017 = vmatprep.subr.bf16.mxu1 %v4750_v53  ;;  %v4772_v14 = vld [vmem:[%s5751_s1 + $0xd8] sm:$0xff]  }
  0x73   : > { %v4780_v39 = vld [vmem:[%s5751_s1 + $0xf8] sm:$0xff]  }
  0x74   : > { %4018 = vmatpush3.bf16.msra.mxu1 %v4750_v53  ;;  %v5424_v53 = vsel %vm1064_vm1, %v1915_v15, %v1916_v5  ;;  %v1647_v15 = vshll.u32 %v5403_v28, 16  ;;  %v4791_v5 = vld [vmem:[%s5751_s1 + $0x110] sm:$0xff]  }
  0x75   : > { %4019 = vmatprep.subr.bf16.mxu1 %v4752_v27 }
  0x77   : > { %3988 = vmatmul.mubr.bf16.gmra.mrb[4].mxu1 %v5036_v31 }
  0x78   : > { %4196 = vmatmul.mubr.bf16.gmra.mrb[20].mxu0 %v5380_v59  ;;  %3991 = vmatprep.mubr.bf16.mxu1 %v5051_v38 }
  0x79   : > { %4199 = vmatprep.mubr.bf16.mxu0 %v5383_v37  ;;  %4020 = vmatpush3.bf16.msra.mxu1 %v4752_v27  ;;  %v4761_v27 = vld [vmem:[%s5751_s1 + $0x1c8] sm:$0xff]  }
  0x7a   : > { %4021 = vmatprep.subr.bf16.mxu1 %v4754_v30 }
  0x7d   : > { %4022 = vmatpush3.bf16.msra.mxu1 %v4754_v30  ;;  %v4776_v30 = vld [vmem:[%s5751_s1 + $0xe8] sm:$0xff]  }
  0x7e   : > { %4023 = vmatprep.subr.bf16.mxu1 %v4758_v51 }
  0x7f   : > { %3992 = vmatmul.mubr.bf16.gmra.mrb[8].mxu1 %v5062_v48 }
  0x80   : > { %4200 = vmatmul.mubr.bf16.gmra.mrb[24].mxu0 %v5400_v57  ;;  %3995 = vmatprep.mubr.bf16.mxu1 %v5089_v62 }
  0x81   : > { %4203 = vmatprep.mubr.bf16.mxu0 %v5409_v7  ;;  %4024 = vmatpush3.bf16.msra.mxu1 %v4758_v51  ;;  %v4789_v51 = vld [vmem:[%s5000_s6 + $0x18] sm:$0xff]  }
  0x82   : > { %4025 = vmatprep.subr.bf16.mxu1 %v4760_v0 }
  0x85   : > { %4026 = vmatpush3.bf16.msra.mxu1 %v4760_v0  ;;  %v4790_v0 = vld [vmem:[%s5751_s1 + $0x108] sm:$0xff]  }
  0x86   : > { %4027 = vmatprep.subr.bf16.mxu1 %v4762_v9 }
  0x87   : > { %3996 = vmatmul.mubr.bf16.gmra.mrb[12].mxu1 %v5101_v8 }
  0x88   : > { %4204 = vmatmul.mubr.bf16.gmra.mrb[28].mxu0 %v5424_v53  ;;  %3999 = vmatprep.mubr.bf16.mxu1 %v5120_v21 }
  0x89   : > { %4223 = vmatprep.mubr.bf16.mxu0 %v5021_v20  ;;  %4028 = vmatpush3.bf16.msra.mxu1 %v4762_v9  ;;  %v4763_v20 = vld [vmem:[%s5751_s1 + $0x1d0] sm:$0xff]   ;;  %v1645_v9 = vshrl.u32 %v5403_v28, 16 }
  0x8a   : > { %4029 = vmatprep.subr.bf16.mxu1 %v4764_v12 }
  0x8d   : > { %4030 = vmatpush3.bf16.msra.mxu1 %v4764_v12  ;;  %v1649_v12 = vrot.slane %v1647_v15, 1 }
  0x8e   : > { %4063 = vmatprep.subr.bf16.mxu1 %v4766_v22 }
  0x8f   : > { %4000 = vmatmul.mubr.bf16.gmra.mrb[16].mxu1 %v5138_v35 }
  0x90   : > { %4224 = vmatmul.mubr.bf16.vlgmr.msra.gmra.mrb[0].mxu0 %v5036_v31  ;;  %4003 = vmatprep.mubr.bf16.mxu1 %v5165_v49  ;;  %v4767_v31 = vld [vmem:[%s5751_s1 + $0x1e0] sm:$0xff]  }
  0x91   : > { %4256 = vmatpush3.bf16.msra.mxu0 %v5356_v43  ;;  %4227 = vmatprep.mubr.bf16.mxu0 %v5051_v38  ;;  %v4769_v38 = vld [vmem:[%s5751_s1 + $0x1e8] sm:$0xff]   ;;  %v4770_v43 = vld [vmem:[%s5751_s1 + $0xd0] sm:$0xff]  }
  0x92   : > { %4257 = vmatprep.subr.bf16.mxu0 %v4761_v27 }
  0x95   : > { %4258 = vmatpush3.bf16.msra.mxu0 %v4761_v27  ;;  %v4792_v27 = vld [vmem:[%s5000_s6 + $0x24] sm:$0xff]  }
  0x96   : > { %4259 = vmatprep.subr.bf16.mxu0 %v4763_v20 }
  0x97   : > { %4004 = vmatmul.mubr.bf16.gmra.mrb[20].mxu1 %v5177_v61 }
  0x98   : > { %4228 = vmatmul.mubr.bf16.gmra.mrb[4].mxu0 %v5062_v48  ;;  %4007 = vmatprep.mubr.bf16.mxu1 %v5201_v19  ;;  %v4771_v48 = vld [vmem:[%s5751_s1 + $0x1f0] sm:$0xff]  }
  0x99   : > { %4231 = vmatprep.mubr.bf16.mxu0 %v5089_v62  ;;  %4260 = vmatpush3.bf16.msra.mxu0 %v4763_v20  ;;  %v4773_v62 = vld [vmem:[%s5751_s1 + $0x1f8] sm:$0xff]   ;;  %v4793_v20 = vld [vmem:[%s5000_s6 + $0x30] sm:$0xff]  }
  0x9a   : > { %4261 = vmatprep.subr.bf16.mxu0 %v4765_v56 }
  0x9d   : > { %4262 = vmatpush3.bf16.msra.mxu0 %v4765_v56  ;;  %v1650_v56 = vor.u32 %v1649_v12, %v1645_v9 }
  0x9e   : > { %4263 = vmatprep.subr.bf16.mxu0 %v4767_v31 }
  0x9f   : > { %4008 = vmatmul.mubr.bf16.gmra.mrb[24].mxu1 %v5219_v41 }
  0xa0   : > { %4232 = vmatmul.mubr.bf16.gmra.mrb[8].mxu0 %v5101_v8  ;;  %4011 = vmatprep.mubr.bf16.mxu1 %v5247_v63  ;;  %v4775_v8 = vld [vmem:[%s5751_s1 + $0x200] sm:$0xff]  }
  0xa1   : > { %4235 = vmatprep.mubr.bf16.mxu0 %v5120_v21  ;;  %4264 = vmatpush3.bf16.msra.mxu0 %v4767_v31  ;;  %v4768_v21 = vld [vmem:[%s5751_s1 + $0xc8] sm:$0xff]  }
  0xa2   : > { %4265 = vmatprep.subr.bf16.mxu0 %v4769_v38 }
  0xa5   : > { %4266 = vmatpush3.bf16.msra.mxu0 %v4769_v38  ;;  %v4794_v38 = vld [vmem:[%s5751_s1 + $0x118] sm:$0xff]  }
  0xa6   : > { %4267 = vmatprep.subr.bf16.mxu0 %v4771_v48 }
  0xa7   : > { %4012 = vmatmul.mubr.bf16.gmra.mrb[28].mxu1 %v5269_v29 }
  0xa8   : > { %4236 = vmatmul.mubr.bf16.gmra.mrb[12].mxu0 %v5138_v35  ;;  %4031 = vmatprep.mubr.bf16.mxu1 %v4968_v3 }
  0xa9   : > { %4239 = vmatprep.mubr.bf16.mxu0 %v5165_v49  ;;  %4268 = vmatpush3.bf16.msra.mxu0 %v4771_v48  ;;  %v4795_v48 = vld [vmem:[%s5751_s1 + $0x120] sm:$0xff]  }
  0xaa   : > { %4269 = vmatprep.subr.bf16.mxu0 %v4773_v62 }
  0xad   : > { %4270 = vmatpush3.bf16.msra.mxu0 %v4773_v62  ;;  %v4796_v62 = vld [vmem:[%s5000_s6 + $0x3c] sm:$0xff]  }
  0xae   : > { %4303 = vmatprep.subr.bf16.mxu0 %v4775_v8 }
  0xaf   : > { %4032 = vmatmul.mubr.bf16.vlgmr.msra.gmra.mrb[0].mxu1 %v5192_v10  ;;  %v4774_v10 = vld [vmem:[%s5751_s1 + $0xe0] sm:$0xff]  }
  0xb0   : > { %4240 = vmatmul.mubr.bf16.gmra.mrb[16].mxu0 %v5177_v61  ;;  %4064 = vmatpush3.bf16.msra.mxu1 %v4766_v22  ;;  %v1652_v22 = vshll.u32 %v5406_v45, 16 }
  0xb1   : > { %4035 = vmatprep.mubr.bf16.mxu1 %v5228_v47  ;;  %4243 = vmatprep.mubr.bf16.mxu0 %v5201_v19 }
  0xb2   : > { %4065 = vmatprep.subr.bf16.mxu1 %v4768_v21  ;;  %v1654_v31 = vrot.slane %v1652_v22, 1 }
  0xb4   : > { %4066 = vmatpush3.bf16.msra.mxu1 %v4768_v21  ;;  %v1655_v45 = vsel %vm423_vm0, %v1650_v56, %v1654_v31  ;;  %v4798_v21 = vld [vmem:[%s5751_s1 + $0x128] sm:$0xff]  }
  0xb5   : > { %4067 = vmatprep.subr.bf16.mxu1 %v4770_v43 }
  0xb7   : > { %4036 = vmatmul.mubr.bf16.gmra.mrb[4].mxu1 %v5238_v55 }
  0xb8   : > { %4244 = vmatmul.mubr.bf16.gmra.mrb[20].mxu0 %v5219_v41  ;;  %4039 = vmatprep.mubr.bf16.mxu1 %v5275_v32 }
  0xb9   : > { %4247 = vmatprep.mubr.bf16.mxu0 %v5247_v63  ;;  %4068 = vmatpush3.bf16.msra.mxu1 %v4770_v43  ;;  %v4799_v43 = vld [vmem:[%s5751_s1 + $0x130] sm:$0xff]  }
  0xba   : > { %4069 = vmatprep.subr.bf16.mxu1 %v4772_v14 }
  0xbd   : > { %4070 = vmatpush3.bf16.msra.mxu1 %v4772_v14  ;;  %v4800_v14 = vld [vmem:[%s5000_s6 + $0x54] sm:$0xff]  }
  0xbe   : > { %4071 = vmatprep.subr.bf16.mxu1 %v4774_v10 }
  0xbf   : > { %4040 = vmatmul.mubr.bf16.gmra.mrb[8].mxu1 %v5282_v40 }
  0xc0   : > { %4248 = vmatmul.mubr.bf16.gmra.mrb[24].mxu0 %v5269_v29  ;;  %4043 = vmatprep.mubr.bf16.mxu1 %v5311_v24 }
  0xc1   : > { %4251 = vmatprep.mubr.bf16.mxu0 %v5403_v28  ;;  %4072 = vmatpush3.bf16.msra.mxu1 %v4774_v10  ;;  %v4801_v10 = vld [vmem:[%s5751_s1 + $0x138] sm:$0xff]  }
  0xc2   : > { %4073 = vmatprep.subr.bf16.mxu1 %v4776_v30 }
  0xc5   : > { %4074 = vmatpush3.bf16.msra.mxu1 %v4776_v30 }
  0xc6   : > { %4075 = vmatprep.subr.bf16.mxu1 %v4778_v54 }
  0xc7   : > { %4044 = vmatmul.mubr.bf16.gmra.mrb[12].mxu1 %v5317_v26 }
  0xc8   : > { %4252 = vmatmul.mubr.bf16.gmra.mrb[28].mxu0 %v4882_v2  ;;  %4047 = vmatprep.mubr.bf16.mxu1 %v5337_v1  ;;  %v4779_v2 = vld [vmem:[%s5751_s1 + $0x210] sm:$0xff]  }
  0xc9   : > { %4271 = vmatprep.mubr.bf16.mxu0 %v5070_v52  ;;  %4076 = vmatpush3.bf16.msra.mxu1 %v4778_v54  ;;  %v4781_v52 = vld [vmem:[%s5751_s1 + $0x218] sm:$0xff]  }
  0xca   : > { %4077 = vmatprep.subr.bf16.mxu1 %v4780_v39 }
  0xcd   : > { %4078 = vmatpush3.bf16.msra.mxu1 %v4780_v39 }
  0xce   : > { %4351 = vmatprep.subr.bf16.mxu1 %v4786_v46 }
  0xcf   : > { %4048 = vmatmul.mubr.bf16.gmra.mrb[16].mxu1 %v5340_v4 }
  0xd0   : > { %4272 = vmatmul.mubr.bf16.vlgmr.msra.gmra.mrb[0].mxu0 %v5081_v58  ;;  %4051 = vmatprep.mubr.bf16.mxu1 %v5359_v17  ;;  %v4782_v58 = vld [vmem:[%s5751_s1 + $0x220] sm:$0xff]  }
  0xd1   : > { %4304 = vmatpush3.bf16.msra.mxu0 %v4775_v8  ;;  %4275 = vmatprep.mubr.bf16.mxu0 %v5109_v13  ;;  %v4783_v13 = vld [vmem:[%s5751_s1 + $0x228] sm:$0xff]  }
  0xd2   : > { %4305 = vmatprep.subr.bf16.mxu0 %v4777_v34  ;;  %v4797_v8 = vld [vmem:[%s5000_s6 + $0x48] sm:$0xff]  }
  0xd5   : > { %4306 = vmatpush3.bf16.msra.mxu0 %v4777_v34 }
  0xd6   : > { %4307 = vmatprep.subr.bf16.mxu0 %v4779_v2 }
  0xd7   : > { %4052 = vmatmul.mubr.bf16.gmra.mrb[20].mxu1 %v5362_v23 }
  0xd8   : > { %4276 = vmatmul.mubr.bf16.gmra.mrb[4].mxu0 %v5116_v18  ;;  %4055 = vmatprep.mubr.bf16.mxu1 %v5380_v59  ;;  %v4784_v18 = vld [vmem:[%s5751_s1 + $0x230] sm:$0xff]  }
  0xd9   : > { %4279 = vmatprep.mubr.bf16.mxu0 %v5141_v36  ;;  %4308 = vmatpush3.bf16.msra.mxu0 %v4779_v2  ;;  %v4785_v36 = vld [vmem:[%s5751_s1 + $0x238] sm:$0xff]  }
  0xda   : > { %4309 = vmatprep.subr.bf16.mxu0 %v4781_v52 }
  0xdd   : > { %4310 = vmatpush3.bf16.msra.mxu0 %v4781_v52 }
  0xde   : > { %4311 = vmatprep.subr.bf16.mxu0 %v4782_v58 }
  0xdf   : > { %4056 = vmatmul.mubr.bf16.gmra.mrb[24].mxu1 %v5383_v37 }
  0xe0   : > { %4280 = vmatmul.mubr.bf16.gmra.mrb[8].mxu0 %v5152_v44  ;;  %4059 = vmatprep.mubr.bf16.mxu1 %v5400_v57  ;;  %v4787_v44 = vld [vmem:[%s5000_s6] sm:$0xff]  }
  0xe1   : > { %4283 = vmatprep.mubr.bf16.mxu0 %v5186_v6  ;;  %4312 = vmatpush3.bf16.msra.mxu0 %v4782_v58  ;;  %v4788_v6 = vld [vmem:[%s5000_s6 + $0xc] sm:$0xff]  }
  0xe2   : > { %4313 = vmatprep.subr.bf16.mxu0 %v4783_v13 }
  0xe5   : > { %4314 = vmatpush3.bf16.msra.mxu0 %v4783_v13 }
  0xe6   : > { %4315 = vmatprep.subr.bf16.mxu0 %v4784_v18 }
  0xe7   : > { %4060 = vmatmul.mubr.bf16.gmra.mrb[28].mxu1 %v5409_v7 }
  0xe8   : > { %4284 = vmatmul.mubr.bf16.gmra.mrb[12].mxu0 %v5222_v42  ;;  %4079 = vmatprep.mubr.bf16.mxu1 %v4787_v44 }
  0xe9   : > { %4287 = vmatprep.mubr.bf16.mxu0 %v5231_v50  ;;  %4316 = vmatpush3.bf16.msra.mxu0 %v4784_v18 }
  0xea   : > { %4317 = vmatprep.subr.bf16.mxu0 %v4785_v36 }
  0xed   : > { %4318 = vmatpush3.bf16.msra.mxu0 %v4785_v36 }
  0xef   : > { %4080 = vmatmul.mubr.bf16.vlgmr.msra.gmra.mrb[0].mxu1 %v4788_v6 }
  0xf0   : > { %4288 = vmatmul.mubr.bf16.gmra.mrb[16].mxu0 %v5264_v25  ;;  %4359 = vmatpush3.bf16.msra.mxu1 %v4786_v46 }
  0xf1   : > { %4083 = vmatprep.mubr.bf16.mxu1 %v4789_v51  ;;  %4291 = vmatprep.mubr.bf16.mxu0 %v5278_v33 }
  0xf2   : > { %4352 = vmatprep.subr.bf16.mxu1 %v4790_v0 }
  0xf4   : > { %4360 = vmatpush3.bf16.msra.mxu1 %v4790_v0 }
  0xf5   : > { %4353 = vmatprep.subr.bf16.mxu1 %v4791_v5 }
  0xf7   : > { %4084 = vmatmul.mubr.bf16.gmra.mrb[4].mxu1 %v4792_v27 }
  0xf8   : > { %4292 = vmatmul.mubr.bf16.gmra.mrb[20].mxu0 %v5306_v11  ;;  %4087 = vmatprep.mubr.bf16.mxu1 %v4793_v20 }
  0xf9   : > { %4295 = vmatprep.mubr.bf16.mxu0 %v5314_v16  ;;  %4361 = vmatpush3.bf16.msra.mxu1 %v4791_v5 }
  0xfa   : > { %4354 = vmatprep.subr.bf16.mxu1 %v4794_v38 }
  0xfd   : > { %4362 = vmatpush3.bf16.msra.mxu1 %v4794_v38 }
  0xfe   : > { %4355 = vmatprep.subr.bf16.mxu1 %v4795_v48 }
  0xff   : > { %4088 = vmatmul.mubr.bf16.gmra.mrb[8].mxu1 %v4796_v62 }
 0x100   : > { %4296 = vmatmul.mubr.bf16.gmra.mrb[24].mxu0 %v5334_v60  ;;  %4091 = vmatprep.mubr.bf16.mxu1 %v4797_v8 }
 0x101   : > { %4299 = vmatprep.mubr.bf16.mxu0 %v1655_v45  ;;  %4363 = vmatpush3.bf16.msra.mxu1 %v4795_v48 }
 0x102   : > { %4356 = vmatprep.subr.bf16.mxu1 %v4798_v21 }
 0x105   : > { %4364 = vmatpush3.bf16.msra.mxu1 %v4798_v21 }
 0x106   : > { %4357 = vmatprep.subr.bf16.mxu1 %v4799_v43 }
 0x107   : > { %4092 = vmatmul.mubr.bf16.gmra.mrb[12].mxu1 %v4800_v14 }
 0x108   : > { %4300 = vmatmul.mubr.bf16.gmra.mrb[28].mxu0 %v4968_v3  ;;  %4095 = vmatprep.mubr.bf16.mxu1 %v5138_v35 }
 0x109   : > { %4319 = vmatprep.mubr.bf16.mxu0 %v5228_v47  ;;  %4365 = vmatpush3.bf16.msra.mxu1 %v4799_v43 }
 0x10a   : > { %4358 = vmatprep.subr.bf16.mxu1 %v4801_v10 }
 0x10d   : > { %4366 = vmatpush3.bf16.msra.mxu1 %v4801_v10 }
 0x10f   : > { %4096 = vmatmul.mubr.bf16.gmra.mrb[16].mxu1 %v5165_v49 }
 0x110   : > { %4320 = vmatmul.mubr.bf16.vlgmr.msra.gmra.mrb[0].mxu0 %v5238_v55  ;;  %4099 = vmatprep.mubr.bf16.mxu1 %v5177_v61 }
 0x111   : > { %4323 = vmatprep.mubr.bf16.mxu0 %v5275_v32 }
 0x117   : > { %4100 = vmatmul.mubr.bf16.gmra.mrb[20].mxu1 %v5201_v19 }
 0x118   : > { %4324 = vmatmul.mubr.bf16.gmra.mrb[4].mxu0 %v5282_v40  ;;  %4103 = vmatprep.mubr.bf16.mxu1 %v5219_v41 }
 0x119   : > { %4327 = vmatprep.mubr.bf16.mxu0 %v5311_v24  ;;  %v5634_v24 = vld [vmem:[%s5752_s2] ss:$0 sm:$0xff] }
 0x11f   : > { %4104 = vmatmul.mubr.bf16.gmra.mrb[24].mxu1 %v5247_v63 }
 0x120   : > { %4328 = vmatmul.mubr.bf16.gmra.mrb[8].mxu0 %v5317_v26  ;;  %4107 = vmatprep.mubr.bf16.mxu1 %v5269_v29 }
 0x121   : > { %4331 = vmatprep.mubr.bf16.mxu0 %v5337_v1 }
 0x127   : > { %4108 = vmatmul.mubr.bf16.gmra.mrb[28].mxu1 %v5403_v28 }
 0x128   : > { %4332 = vmatmul.mubr.bf16.gmra.mrb[12].mxu0 %v5340_v4  ;;  %4143 = vmatprep.mubr.bf16.mxu1 %v5222_v42 }
 0x129   : > { %4335 = vmatprep.mubr.bf16.mxu0 %v5359_v17 }
 0x12f   : > { %4144 = vmatmul.mubr.bf16.vlgmr.msra.gmra.mrb[16].mxu1 %v5231_v50 }
 0x130   : > { %4336 = vmatmul.mubr.bf16.gmra.mrb[16].mxu0 %v5362_v23  ;;  %4147 = vmatprep.mubr.bf16.mxu1 %v5264_v25 }
 0x131   : > { %4339 = vmatprep.mubr.bf16.mxu0 %v5380_v59 }
 0x137   : > { %4148 = vmatmul.mubr.bf16.gmra.mrb[20].mxu1 %v5278_v33 }
 0x138   : > { %4340 = vmatmul.mubr.bf16.gmra.mrb[20].mxu0 %v5383_v37  ;;  %4151 = vmatprep.mubr.bf16.mxu1 %v5306_v11 }
 0x139   : > { %4343 = vmatprep.mubr.bf16.mxu0 %v5400_v57 }
 0x13f   : > { %4152 = vmatmul.mubr.bf16.gmra.mrb[24].mxu1 %v5314_v16 }
 0x140   : > { %4344 = vmatmul.mubr.bf16.gmra.mrb[24].mxu0 %v5409_v7  ;;  %4155 = vmatprep.mubr.bf16.mxu1 %v5334_v60 }
 0x141   : > { %4347 = vmatprep.mubr.bf16.mxu0 %v5424_v53 }
 0x147   : > { %4156 = vmatmul.mubr.bf16.gmra.mrb[28].mxu1 %v1655_v45 }
 0x148   : > { %4348 = vmatmul.mubr.bf16.gmra.mrb[28].mxu0 %v4968_v3 }
 0x1c2   : > { %v4081_v35 = vpop.f32.mrb[0].mxu1 }
 0x1c3   : > { %v1485_v49 = vpop.f32.mrb[1].mxu1 }
 0x1c4   : > { %v4082_v61 = vpop.f32.mrb[2].mxu1 }
 0x1c5   : > { %v1488_v19 = vpop.f32.mrb[3].mxu1 }
 0x1ca   : > { %v4085_v41 = vpop.f32.mrb[4].mxu1 }
 0x1cb   : > { %v1501_v42 = vpop.f32.mrb[5].mxu1 }
 0x1cc   : > { %v4086_v47 = vpop.f32.mrb[6].mxu1 }
 0x1cd   : > { %v1504_v50 = vpop.f32.mrb[7].mxu1 }
 0x1d2   : > { %v4089_v55 = vpop.f32.mrb[8].mxu1 }
 0x1d3   : > { %v1517_v63 = vpop.f32.mrb[9].mxu1 }
 0x1d4   : > { %v4090_v25 = vpop.f32.mrb[10].mxu1 }
 0x1d5   : > { %v1520_v29 = vpop.f32.mrb[11].mxu1 }
 0x1da   : > { %v5623_v32 = vpop.f32.mrb[12].mxu1 }
 0x1db   : > { %v5625_v33 = vpop.f32.mrb[13].mxu1 }
 0x1dc   : > { %v5627_v40 = vpop.f32.mrb[14].mxu1 }
 0x1dd   : > { %v5629_v3 = vpop.f32.mrb[15].mxu1 }
 0x1e3   : > { %v4321_v11 = vpop.f32.mrb[0].mxu0 }
 0x1e4   : > { %v4367_v16 = vadd.f32 %v4321_v11, %v4081_v35  ;;  %v2792_v26 = vpop.f32.mrb[1].mxu0 }
 0x1e5   : > { %v4368_v60 = vadd.f32 %v2792_v26, %v1485_v49  ;;  %v4322_v1 = vpop.f32.mrb[2].mxu0 }
 0x1e6   : > { %v2960_v4 = vadd.f32 %v4367_v16, %v5634_v24  ;;  %v4369_v17 = vadd.f32 %v4322_v1, %v4082_v61  ;;  %v2795_v23 = vpop.f32.mrb[3].mxu0 }
 0x1e7   : > { %v2958_v59 = vadd.f32 %v4368_v60, %v5634_v24  ;;  %v4370_v37 = vadd.f32 %v2795_v23, %v1488_v19 }
 0x1e8   : > { %v2961_v57 = vadd.f32 %v4369_v17, %v5634_v24  ;;  %v2992_v7 = vmax.f32 %v2960_v4, 0.0 }
 0x1e9   : > { %v2959_v28 = vadd.f32 %v4370_v37, %v5634_v24  ;;  %v2990_v30 = vmax.f32 %v2958_v59, 0.0 }
 0x1ea   : > { %v2993_v53 = vmax.f32 %v2961_v57, 0.0 }
 0x1eb   : > { %v2991_v54 = vmax.f32 %v2959_v28, 0.0  ;;  %v4325_v39 = vpop.f32.mrb[4].mxu0 }
 0x1ec   : > { %v3616_v34 = vpack.c.bf16 %v2993_v53, %v2992_v7  ;;  %v4371_v46 = vadd.f32 %v4325_v39, %v4085_v41  ;;  %v2808_v2 = vpop.f32.mrb[5].mxu0 }
 0x1ed   : > { %v3611_v52 = vpack.c.bf16 %v2991_v54, %v2990_v30  ;;  %v4372_v58 = vadd.f32 %v2808_v2, %v1501_v42  ;;  %v4326_v13 = vpop.f32.mrb[6].mxu0 }
 0x1ee   : > { %3688 = vst [vmem:[%s5643_s5 + $0x8] sm:$0xff] %v3616_v34   ;;  %v2964_v18 = vadd.f32 %v4371_v46, %v5634_v24  ;;  %v4373_v36 = vadd.f32 %v4326_v13, %v4086_v47  ;;  %v2811_v44 = vpop.f32.mrb[7].mxu0 }
 0x1ef   : > { %3612 = vst [vmem:[%s5643_s5] sm:$0xff] %v3611_v52   ;;  %v2962_v6 = vadd.f32 %v4372_v58, %v5634_v24  ;;  %v4374_v51 = vadd.f32 %v2811_v44, %v1504_v50 }
 0x1f0   : > { %v2965_v0 = vadd.f32 %v4373_v36, %v5634_v24  ;;  %v2996_v5 = vmax.f32 %v2964_v18, 0.0 }
 0x1f1   : > { %v2963_v15 = vadd.f32 %v4374_v51, %v5634_v24  ;;  %v2994_v12 = vmax.f32 %v2962_v6, 0.0 }
 0x1f2   : > { %v2997_v9 = vmax.f32 %v2965_v0, 0.0 }
 0x1f3   : > { %v2995_v22 = vmax.f32 %v2963_v15, 0.0  ;;  %v4329_v27 = vpop.f32.mrb[8].mxu0 }
 0x1f4   : > { %v3626_v20 = vpack.c.bf16 %v2997_v9, %v2996_v5  ;;  %v4375_v56 = vadd.f32 %v4329_v27, %v4089_v55  ;;  %v2824_v31 = vpop.f32.mrb[9].mxu0 }
 0x1f5   : > { %v3621_v38 = vpack.c.bf16 %v2995_v22, %v2994_v12  ;;  %v4376_v45 = vadd.f32 %v2824_v31, %v1517_v63  ;;  %v4330_v48 = vpop.f32.mrb[10].mxu0 }
 0x1f6   : > { %3690 = vst [vmem:[%s5643_s5 + $0x18] sm:$0xff] %v3626_v20   ;;  %v2968_v62 = vadd.f32 %v4375_v56, %v5634_v24  ;;  %v4377_v8 = vadd.f32 %v4330_v48, %v4090_v25  ;;  %v2827_v21 = vpop.f32.mrb[11].mxu0 }
 0x1f7   : > { %3689 = vst [vmem:[%s5643_s5 + $0x10] sm:$0xff] %v3621_v38   ;;  %v2966_v43 = vadd.f32 %v4376_v45, %v5634_v24  ;;  %v4378_v14 = vadd.f32 %v2827_v21, %v1520_v29 }
 0x1f8   : > { %v2969_v10 = vadd.f32 %v4377_v8, %v5634_v24  ;;  %v3000_v49 = vmax.f32 %v2968_v62, 0.0 }
 0x1f9   : > { %v2967_v35 = vadd.f32 %v4378_v14, %v5634_v24  ;;  %v2998_v19 = vmax.f32 %v2966_v43, 0.0 }
 0x1fa   : > { %v3001_v61 = vmax.f32 %v2969_v10, 0.0 }
 0x1fb   : > { %v2999_v41 = vmax.f32 %v2967_v35, 0.0  ;;  %v4333_v42 = vpop.f32.mrb[12].mxu0 }
 0x1fc   : > { %v3636_v47 = vpack.c.bf16 %v3001_v61, %v3000_v49  ;;  %v4379_v50 = vadd.f32 %v4333_v42, %v5623_v32  ;;  %v2840_v55 = vpop.f32.mrb[13].mxu0 }
 0x1fd   : > { %v3631_v63 = vpack.c.bf16 %v2999_v41, %v2998_v19  ;;  %v4380_v25 = vadd.f32 %v2840_v55, %v5625_v33  ;;  %v4334_v11 = vpop.f32.mrb[14].mxu0 }
 0x1fe   : > { %3692 = vst [vmem:[%s5643_s5 + $0x28] sm:$0xff] %v3636_v47   ;;  %v2972_v29 = vadd.f32 %v4379_v50, %v5634_v24  ;;  %v4381_v16 = vadd.f32 %v4334_v11, %v5627_v40  ;;  %v2843_v26 = vpop.f32.mrb[15].mxu0 }
 0x1ff   : > { %3691 = vst [vmem:[%s5643_s5 + $0x20] sm:$0xff] %v3631_v63   ;;  %v2970_v60 = vadd.f32 %v4380_v25, %v5634_v24  ;;  %v4382_v1 = vadd.f32 %v2843_v26, %v5629_v3 }
 0x200   : > { %v2973_v4 = vadd.f32 %v4381_v16, %v5634_v24  ;;  %v3004_v17 = vmax.f32 %v2972_v29, 0.0 }
 0x201   : > { %v2971_v32 = vadd.f32 %v4382_v1, %v5634_v24  ;;  %v3002_v59 = vmax.f32 %v2970_v60, 0.0 }
 0x202   : > { %v3005_v23 = vmax.f32 %v2973_v4, 0.0  ;;  %v4145_v33 = vpop.f32.mrb[16].mxu1 }
 0x203   : > { %v3003_v37 = vmax.f32 %v2971_v32, 0.0  ;;  %v4337_v57 = vpop.f32.mrb[16].mxu0  ;;  %v1820_v28 = vpop.f32.mrb[17].mxu1 }
 0x204   : > { %v3646_v40 = vpack.c.bf16 %v3005_v23, %v3004_v17  ;;  %v4383_v7 = vadd.f32 %v4337_v57, %v4145_v33  ;;  %v2856_v53 = vpop.f32.mrb[17].mxu0  ;;  %v4146_v30 = vpop.f32.mrb[18].mxu1 }
 0x205   : > { %v3641_v54 = vpack.c.bf16 %v3003_v37, %v3002_v59  ;;  %v4384_v39 = vadd.f32 %v2856_v53, %v1820_v28  ;;  %v4338_v3 = vpop.f32.mrb[18].mxu0  ;;  %v1823_v34 = vpop.f32.mrb[19].mxu1 }
 0x206   : > { %3694 = vst [vmem:[%s5643_s5 + $0x38] sm:$0xff] %v3646_v40   ;;  %v2976_v46 = vadd.f32 %v4383_v7, %v5634_v24  ;;  %v4385_v2 = vadd.f32 %v4338_v3, %v4146_v30  ;;  %v2859_v52 = vpop.f32.mrb[19].mxu0 }
 0x207   : > { %3693 = vst [vmem:[%s5643_s5 + $0x30] sm:$0xff] %v3641_v54   ;;  %v2974_v58 = vadd.f32 %v4384_v39, %v5634_v24  ;;  %v4386_v13 = vadd.f32 %v2859_v52, %v1823_v34 }
 0x208   : > { %v2977_v18 = vadd.f32 %v4385_v2, %v5634_v24  ;;  %v3008_v44 = vmax.f32 %v2976_v46, 0.0 }
 0x209   : > { %v2975_v36 = vadd.f32 %v4386_v13, %v5634_v24  ;;  %v3006_v0 = vmax.f32 %v2974_v58, 0.0 }
 0x20a   : > { %v3009_v6 = vmax.f32 %v2977_v18, 0.0  ;;  %v4149_v51 = vpop.f32.mrb[20].mxu1 }
 0x20b   : > { %v3007_v15 = vmax.f32 %v2975_v36, 0.0  ;;  %v4341_v5 = vpop.f32.mrb[20].mxu0  ;;  %v1836_v9 = vpop.f32.mrb[21].mxu1 }
 0x20c   : > { %v3656_v12 = vpack.c.bf16 %v3009_v6, %v3008_v44  ;;  %v4387_v22 = vadd.f32 %v4341_v5, %v4149_v51  ;;  %v2872_v27 = vpop.f32.mrb[21].mxu0  ;;  %v4150_v20 = vpop.f32.mrb[22].mxu1 }
 0x20d   : > { %v3651_v56 = vpack.c.bf16 %v3007_v15, %v3006_v0  ;;  %v4388_v31 = vadd.f32 %v2872_v27, %v1836_v9  ;;  %v4342_v38 = vpop.f32.mrb[22].mxu0  ;;  %v1839_v45 = vpop.f32.mrb[23].mxu1 }
 0x20e   : > { %3696 = vst [vmem:[%s5643_s5 + $0x48] sm:$0xff] %v3656_v12   ;;  %v2980_v48 = vadd.f32 %v4387_v22, %v5634_v24  ;;  %v4389_v62 = vadd.f32 %v4342_v38, %v4150_v20  ;;  %v2875_v8 = vpop.f32.mrb[23].mxu0 }
 0x20f   : > { %3695 = vst [vmem:[%s5643_s5 + $0x40] sm:$0xff] %v3651_v56   ;;  %v2978_v21 = vadd.f32 %v4388_v31, %v5634_v24  ;;  %v4390_v43 = vadd.f32 %v2875_v8, %v1839_v45 }
 0x210   : > { %v2981_v14 = vadd.f32 %v4389_v62, %v5634_v24  ;;  %v3012_v35 = vmax.f32 %v2980_v48, 0.0 }
 0x211   : > { %v2979_v10 = vadd.f32 %v4390_v43, %v5634_v24  ;;  %v3010_v19 = vmax.f32 %v2978_v21, 0.0 }
 0x212   : > { %v3013_v49 = vmax.f32 %v2981_v14, 0.0  ;;  %v4153_v61 = vpop.f32.mrb[24].mxu1 }
 0x213   : > { %v3011_v41 = vmax.f32 %v2979_v10, 0.0  ;;  %v4345_v42 = vpop.f32.mrb[24].mxu0  ;;  %v1852_v47 = vpop.f32.mrb[25].mxu1 }
 0x214   : > { %v3666_v50 = vpack.c.bf16 %v3013_v49, %v3012_v35  ;;  %v4391_v55 = vadd.f32 %v4345_v42, %v4153_v61  ;;  %v2888_v63 = vpop.f32.mrb[25].mxu0  ;;  %v4154_v25 = vpop.f32.mrb[26].mxu1 }
 0x215   : > { %v3661_v11 = vpack.c.bf16 %v3011_v41, %v3010_v19  ;;  %v4392_v29 = vadd.f32 %v2888_v63, %v1852_v47  ;;  %v4346_v16 = vpop.f32.mrb[26].mxu0  ;;  %v1855_v26 = vpop.f32.mrb[27].mxu1 }
 0x216   : > { %3698 = vst [vmem:[%s5643_s5 + $0x58] sm:$0xff] %v3666_v50   ;;  %v2984_v60 = vadd.f32 %v4391_v55, %v5634_v24  ;;  %v4393_v1 = vadd.f32 %v4346_v16, %v4154_v25  ;;  %v2891_v4 = vpop.f32.mrb[27].mxu0 }
 0x217   : > { %3697 = vst [vmem:[%s5643_s5 + $0x50] sm:$0xff] %v3661_v11   ;;  %v2982_v32 = vadd.f32 %v4392_v29, %v5634_v24  ;;  %v4394_v17 = vadd.f32 %v2891_v4, %v1855_v26 }
 0x218   : > { %v2985_v23 = vadd.f32 %v4393_v1, %v5634_v24  ;;  %v3016_v59 = vmax.f32 %v2984_v60, 0.0 }
 0x219   : > { %v2983_v33 = vadd.f32 %v4394_v17, %v5634_v24  ;;  %v3014_v28 = vmax.f32 %v2982_v32, 0.0 }
 0x21a   : > { %v3017_v37 = vmax.f32 %v2985_v23, 0.0  ;;  %v4157_v57 = vpop.f32.mrb[28].mxu1 }
 0x21b   : > { %v3015_v40 = vmax.f32 %v2983_v33, 0.0  ;;  %v4349_v7 = vpop.f32.mrb[28].mxu0  ;;  %v1868_v53 = vpop.f32.mrb[29].mxu1 }
 0x21c   : > { %v3676_v30 = vpack.c.bf16 %v3017_v37, %v3016_v59  ;;  %v4395_v54 = vadd.f32 %v4349_v7, %v4157_v57  ;;  %v2904_v39 = vpop.f32.mrb[29].mxu0  ;;  %v4158_v3 = vpop.f32.mrb[30].mxu1 }
 0x21d   : > { %v3671_v34 = vpack.c.bf16 %v3015_v40, %v3014_v28  ;;  %v4396_v46 = vadd.f32 %v2904_v39, %v1868_v53  ;;  %v4350_v2 = vpop.f32.mrb[30].mxu0  ;;  %v1871_v52 = vpop.f32.mrb[31].mxu1 }
 0x21e   : > { %3700 = vst [vmem:[%s5643_s5 + $0x68] sm:$0xff] %v3676_v30   ;;  %v2988_v58 = vadd.f32 %v4395_v54, %v5634_v24  ;;  %v4397_v13 = vadd.f32 %v4350_v2, %v4158_v3  ;;  %v2907_v18 = vpop.f32.mrb[31].mxu0 }
 0x21f   : > { %3699 = vst [vmem:[%s5643_s5 + $0x60] sm:$0xff] %v3671_v34   ;;  %v2986_v36 = vadd.f32 %v4396_v46, %v5634_v24  ;;  %v4398_v44 = vadd.f32 %v2907_v18, %v1871_v52 }
 0x220   : > { %v2989_v6 = vadd.f32 %v4397_v13, %v5634_v24  ;;  %v3020_v0 = vmax.f32 %v2988_v58, 0.0 }
 0x221   : > { %v2987_v51 = vadd.f32 %v4398_v44, %v5634_v24  ;;  %v3018_v5 = vmax.f32 %v2986_v36, 0.0 }
 0x222   : > { %v3021_v15 = vmax.f32 %v2989_v6, 0.0 }
 0x223   : > { %v3019_v9 = vmax.f32 %v2987_v51, 0.0 }
 0x224   : > { %v3686_v12 = vpack.c.bf16 %v3021_v15, %v3020_v0 }
 0x225   : > { %v3681_v22 = vpack.c.bf16 %v3019_v9, %v3018_v5 }
 0x226   : > { %3702 = vst [vmem:[%s5643_s5 + $0x78] sm:$0xff] %v3686_v12  }
 0x227   : > { %3701 = vst [vmem:[%s5643_s5 + $0x70] sm:$0xff] %v3681_v22  }
 0x228   : > { %4815 = shalt.err (!%p4812_p5)
}
 0x229   : > { %s4816_s26 = scalar_lea.hbm %s5696_s11, 2048  ;;  %s4820_s6 = scalar_lea.hbm %s5753_s3, 4096 }
 0x22a   : > { %p4817_p6 = scmp.ne.s32.totalorder %s5696_s11, %s4816_s26  ;;  %p4821_p10 = scmp.lt.u32.totalorder %s5696_s11, %s5753_s3 }
 0x22b   : > { %p4822_p11 = scmp.lt.u32.totalorder %s4820_s6, %s4816_s26  ;;  %p4824_p13 = scmp.lt.u32.totalorder %s4816_s26, %s5696_s11 }
 0x22c   : > { %p4818_p7 = pnand %p4817_p6, %p4946_p4 }
 0x22d   : > { %p4823_p12 = por %p4822_p11, %p4821_p10 }
 0x22e   : > { %p4819_p9 = pneg %p4818_p7 }
 0x22f   : > { %p4825_p0 = por %p4824_p13, %p4823_p12 }
 0x231   : > { %p4826_p1 = pnand %p4825_p0, %p4819_p9 }
 0x233   : > { %4829 = shalt.err (!%p4826_p1)
}
 0x234   : > { %s4884_s4 = smov 64   ;;  %s4885_s5 = smov 4  }
 0x235   : > { %4624 = dma.vmem_to_hbm [thread:$0]  (%p4946_p4), %s5698_s8, 2048, %s5696_s11, %s5704_s15, %s4884_s4, %s4884_s4, %s4885_s5  }
 0x236 PF: > { %p4630_p2 = scmp.ge.s32.totalorder %s4880_s17, 2  ;;  %s3212_s7 = sand.u32 1, %s4860_s12  }
 0x237   : > { %s3213_s9 = scalar_lea.sflag [#allocation3], %s3212_s7 }
 0x238   : > { %p4627_p3 = pnand %p4630_p2, %p4953_p8 }
 0x23a   : > { %4855 = dma.done.wait (!%p4627_p3), %s3213_s9, 2048  }
 0x23b   : > { %4857 = vsyncadd (!%p4627_p3), %s3213_s9, 4294965248  ;;  %s16_s17 = sadd.s32 1, %s4880_s17   ;;  %s5756_s12 = smov %s4864_s13 }
 0x23c   : > { %p13_p5 = scmp.ge.s32.totalorder %s16_s17, 4   ;;  %s5757_s13 = smov %s4868_s14 }
 0x23d   : > { %s5758_s14 = smov %s4959_s25  ;;  %s5759_s15 = smov %s4876_s16 }
 0x23e   : > { %s5760_s16 = smov %s5762_s20  ;;  %15 = sbr.rel (!%p13_p5) target bundleno = 4 (0x4), region = 81 }
 0x245   :  { %3218 = vsyncpa [#allocation3], 1 }
 0x246   :  { %3220 = vsyncpa [#allocation3 + $0x1], 1 }

</bundles_post_ra>
